<compile_context>
chip_gen: v7x
topology: tpu7x:2x2x1
jax: 0.10.0
libtpu: 0.0.40
codegen_flags: <defaults>
</compile_context>

<pallas_src>
import functools
import math

import jax
import jax.numpy as jnp
from jax.experimental import pallas as pl
from jax.experimental.pallas import tpu as pltpu


def _mha_kernel(q_ref, k_ref, v_ref,
                wq_ref, wk_ref, wv_ref,
                bq_ref, bk_ref, bv_ref,
                wo_ref, bo_ref,
                *out_and_scratch,
                num_heads: int, need_weights: bool):
    """One grid step == TB (flattened) batch elements.

    Refs:
      q_ref: (TB, Sq, E)   k_ref/v_ref: (TB, Sk, E)     [compute dtype]
      wq/wk/wv/wo: (E, E)  (pre-transposed: y = x @ W; wq has 1/sqrt(Dh) folded)
      bq/bk/bv/bo: (1, E)  f32
      outputs: o_ref (TB, Sq, E) [+ w_ref (TB, Sq, Sk) if need_weights]
      scratch: ctx_sc (TB*Sq, E) compute-dtype VMEM for the concat-free
               per-head context writes.
    """
    if need_weights:
        o_ref, w_ref, ctx_sc = out_and_scratch
    else:
        o_ref, ctx_sc = out_and_scratch
        w_ref = None

    TB, Sq, E = q_ref.shape
    Sk = k_ref.shape[1]
    H = num_heads
    Dh = E // H
    cdt = wq_ref.dtype  # compute dtype chosen by the wrapper

    # ---- fused input projections with M = TB*S (MXU-friendly), f32 acc ----
    q2 = jnp.dot(q_ref[...].reshape(TB * Sq, E), wq_ref[...],
                 preferred_element_type=jnp.float32) + bq_ref[...]
    k2 = jnp.dot(k_ref[...].reshape(TB * Sk, E), wk_ref[...],
                 preferred_element_type=jnp.float32) + bk_ref[...]
    v2 = jnp.dot(v_ref[...].reshape(TB * Sk, E), wv_ref[...],
                 preferred_element_type=jnp.float32) + bv_ref[...]

    # Single cast back to compute dtype for the attention matmuls.
    q3 = q2.reshape(TB, Sq, E).astype(cdt)
    k3 = k2.reshape(TB, Sk, E).astype(cdt)
    v3 = v2.reshape(TB, Sk, E).astype(cdt)

    if need_weights:
        w_sum = jnp.zeros((TB, Sq, Sk), jnp.float32)

    # Static loop over heads; all slices are static lane slices.
    for h in range(H):
        lo = h * Dh
        hi = lo + Dh
        qh = q3[:, :, lo:hi]                      # (TB, Sq, Dh)
        kh = k3[:, :, lo:hi]                      # (TB, Sk, Dh)
        vh = v3[:, :, lo:hi]                      # (TB, Sk, Dh)

        # Contraction over last dims: MXU transposed-RHS path, no vxpose.
        s = jnp.einsum('bqd,bkd->bqk', qh, kh,
                       preferred_element_type=jnp.float32)   # (TB, Sq, Sk)

        m = jnp.max(s, axis=-1, keepdims=True)
        p = jnp.exp(s - m)
        denom = jnp.sum(p, axis=-1, keepdims=True)
        p = p * pl.reciprocal(denom, approx=True)             # EUP slot

        ctx_h = jnp.einsum('bqk,bkd->bqd', p.astype(cdt), vh,
                           preferred_element_type=jnp.float32)  # (TB, Sq, Dh)

        # Write this head's context at its lane offset; the output projection
        # then runs ONCE after the loop with K = E (full MXU depth).
        ctx_sc[:, lo:hi] = ctx_h.reshape(TB * Sq, Dh).astype(cdt)

        if need_weights:
            w_sum = w_sum + p

    out = jnp.dot(ctx_sc[...], wo_ref[...],
                  preferred_element_type=jnp.float32) + bo_ref[...]
    o_ref[...] = out.reshape(TB, Sq, E).astype(o_ref.dtype)
    if need_weights:
        w_ref[...] = (w_sum * (1.0 / H)).astype(w_ref.dtype)


def _vmem_budget_bytes():
    """Generation-aware VMEM budget (leave headroom under physical VMEM)."""
    cap = None
    try:
        info = pltpu.get_tpu_info()
        cap = getattr(info, "vmem_capacity_bytes", None)
    except Exception:
        cap = None
    if not cap:
        cap = 64 * 1024 * 1024          # conservative fallback (v7x per-core)
    # v7x (64 MiB) -> 48 MiB ; v5e/v6e (128 MiB) -> 96 MiB (capped at 100 MiB)
    return int(min(0.75 * cap, 100 * 1024 * 1024))


def _auto_block_b(B, Sq, Sk, E, need_weights, io_bytes, cdt_bytes, w_bytes,
                  vmem_budget):
    """Pick the largest batch tile whose per-step working set fits the budget."""
    per_b = (
        2 * (2 * Sq * E + 2 * Sk * E) * io_bytes           # q,o + k,v tiles (double-buffered)
        + (2 * Sq * Sk * w_bytes if need_weights else 0)   # weights tile (double-buffered)
        + (Sq * E + 2 * Sk * E) * 4                        # q2,k2,v2 f32
        + (Sq * E + 2 * Sk * E) * cdt_bytes                # q3,k3,v3 compute-dtype copies
        + 3 * Sq * Sk * 4                                  # s, p, w_sum f32
        + 2 * Sq * E * 4                                   # out f32 + reshape
        + Sq * E * cdt_bytes                               # ctx scratch
    )
    fixed = 2 * 4 * E * E * cdt_bytes + 8 * E * 4          # weights (x2 buf) + biases
    usable = int(0.6 * vmem_budget) - fixed                # margin for layout padding/spill
    tb = usable // max(per_b, 1)
    return int(max(1, min(B, tb, 128)))


def _make_params(embed_dim: int, key):
    """Deterministic parameter init (matching torch shapes, pre-transposed)."""
    ks = jax.random.split(key, 5)
    scale = 1.0 / (embed_dim ** 0.5)
    # torch in_proj_weight is (3E, E) applied as x @ W^T; store W^T directly.
    wq = jax.random.normal(ks[0], (embed_dim, embed_dim), jnp.float32) * scale
    wk = jax.random.normal(ks[1], (embed_dim, embed_dim), jnp.float32) * scale
    wv = jax.random.normal(ks[2], (embed_dim, embed_dim), jnp.float32) * scale
    wo = jax.random.normal(ks[3], (embed_dim, embed_dim), jnp.float32) * scale
    b = jax.random.normal(ks[4], (4, embed_dim), jnp.float32) * 0.01
    bq, bk, bv, bo = (b[i][None, :] for i in range(4))  # (1, E) each
    return dict(wq=wq, wk=wk, wv=wv, wo=wo, bq=bq, bk=bk, bv=bv, bo=bo)


def multiheaded_attention(query, key, value, params, num_heads: int, *,
                          need_weights: bool = True,
                          block_b=None,
                          compute_dtype=jnp.bfloat16,
                          weights_dtype=None,
                          vmem_limit_bytes=None):
    """Wrapper mirroring MultiheadedAttention.forward.

    query/key/value: (..., seq, embed).  Returns (out, weights-or-None).

    compute_dtype: dtype for all MXU operands (default bf16 -- MXU-native on
        v5e/v6e/v7x, halves weight+activation DMA; softmax and matmul
        accumulation always stay f32).  Use jnp.float32 for tight numerics.
    block_b: batch elements per grid step; None => derived from the
        generation's VMEM capacity.
    """
    restoration_shape = query.shape[:-2]
    Sq, E = query.shape[-2], query.shape[-1]
    Sk = key.shape[-2]
    assert E % num_heads == 0, "embed_dim must be divisible by num_heads"
    Dh = E // num_heads

    out_dtype = query.dtype
    if weights_dtype is None:
        weights_dtype = query.dtype

    # ---- one-time parameter prep (outside the kernel) ----
    scale = 1.0 / math.sqrt(Dh)
    wq = (params["wq"] * scale).astype(compute_dtype)   # fold 1/sqrt(Dh) into Wq
    wk = params["wk"].astype(compute_dtype)
    wv = params["wv"].astype(compute_dtype)
    wo = params["wo"].astype(compute_dtype)
    bq = (params["bq"] * scale).astype(jnp.float32)     # biases stay f32 (negligible DMA)
    bk = params["bk"].astype(jnp.float32)
    bv = params["bv"].astype(jnp.float32)
    bo = params["bo"].astype(jnp.float32)

    # Activations cast once in the wrapper (no per-step VALU casts).
    q = query.reshape((-1, Sq, E)).astype(compute_dtype)
    k = key.reshape((-1, Sk, E)).astype(compute_dtype)
    v = value.reshape((-1, Sk, E)).astype(compute_dtype)
    B = q.shape[0]

    vmem_budget = (int(vmem_limit_bytes) if vmem_limit_bytes is not None
                   else _vmem_budget_bytes())
    io_bytes = jnp.dtype(compute_dtype).itemsize
    w_bytes = jnp.dtype(weights_dtype).itemsize
    if block_b is None:
        block_b = _auto_block_b(B, Sq, Sk, E, need_weights,
                                io_bytes, io_bytes, w_bytes, vmem_budget)

    TB = max(1, min(int(block_b), B))
    n_blocks = pl.cdiv(B, TB)
    Bp = n_blocks * TB
    if Bp != B:                     # pad batch so the grid divides evenly
        pad = ((0, Bp - B), (0, 0), (0, 0))
        q = jnp.pad(q, pad)
        k = jnp.pad(k, pad)
        v = jnp.pad(v, pad)

    kernel = functools.partial(_mha_kernel, num_heads=num_heads,
                               need_weights=need_weights)

    const2d = lambda b: (0, 0)      # weights/biases: same block every step
    in_specs = [
        pl.BlockSpec((TB, Sq, E), lambda b: (b, 0, 0)),   # query
        pl.BlockSpec((TB, Sk, E), lambda b: (b, 0, 0)),   # key
        pl.BlockSpec((TB, Sk, E), lambda b: (b, 0, 0)),   # value
        pl.BlockSpec((E, E), const2d),                    # Wq (scaled)
        pl.BlockSpec((E, E), const2d),                    # Wk
        pl.BlockSpec((E, E), const2d),                    # Wv
        pl.BlockSpec((1, E), const2d),                    # bq (scaled)
        pl.BlockSpec((1, E), const2d),                    # bk
        pl.BlockSpec((1, E), const2d),                    # bv
        pl.BlockSpec((E, E), const2d),                    # Wo
        pl.BlockSpec((1, E), const2d),                    # bo
    ]
    out_specs = [pl.BlockSpec((TB, Sq, E), lambda b: (b, 0, 0))]
    out_shape = [jax.ShapeDtypeStruct((Bp, Sq, E), out_dtype)]
    if need_weights:
        # TODO(synk): pad Sk to a multiple of 128 for lane-dense weight stores.
        out_specs.append(pl.BlockSpec((TB, Sq, Sk), lambda b: (b, 0, 0)))
        out_shape.append(jax.ShapeDtypeStruct((Bp, Sq, Sk), weights_dtype))

    results = pl.pallas_call(
        kernel,
        out_shape=tuple(out_shape),
        grid_spec=pltpu.PrefetchScalarGridSpec(
            num_scalar_prefetch=0,
            grid=(n_blocks,),
            in_specs=in_specs,
            out_specs=out_specs,
            scratch_shapes=[pltpu.VMEM((TB * Sq, E), compute_dtype)],
        ),
        compiler_params=pltpu.CompilerParams(
            dimension_semantics=("parallel",),        # megacore / v7x 2nd TC
            vmem_limit_bytes=int(vmem_budget),
        ),
    )(q, k, v, wq, wk, wv, bq, bk, bv, wo, bo)

    if need_weights:
        out, weights = results
    else:
        (out,) = results
        weights = None

    out = out[:B].reshape(tuple(restoration_shape) + (Sq, E))
    if weights is not None:
        weights = weights[:B].reshape(tuple(restoration_shape) + (Sq, Sk))
    return out, weights


def _reference(query, key, value, params, num_heads: int):
    """Pure-JAX reference for correctness check."""
    E = query.shape[-1]
    Dh = E // num_heads
    q = query @ params["wq"] + params["bq"][0]
    k = key @ params["wk"] + params["bk"][0]
    v = value @ params["wv"] + params["bv"][0]

    def split(x):
        return jnp.moveaxis(x.reshape(x.shape[:-1] + (num_heads, Dh)), -2, -3)

    qh, kh, vh = split(q), split(k), split(v)          # (..., H, S, Dh)
    s = jnp.einsum("...hqd,...hkd->...hqk", qh, kh) / (Dh ** 0.5)
    p = jax.nn.softmax(s, axis=-1)
    ctx = jnp.einsum("...hqk,...hkd->...hqd", p, vh)
    ctx = jnp.moveaxis(ctx, -3, -2).reshape(q.shape)
    out = ctx @ params["wo"] + params["bo"][0]
    return out, jnp.mean(p, axis=-3)


if __name__ == "__main__":
    embed_dim = 32
    num_heads = 4
    seq = 8
    lead = (2, 3)   # arbitrary leading batch dims, exercised by the adapter

    kp = jax.random.PRNGKey(0)
    k1, k2, k3, k4 = jax.random.split(kp, 4)
    params = _make_params(embed_dim, k1)

    query = jax.random.normal(k2, lead + (seq, embed_dim), jnp.float32)
    key = jax.random.normal(k3, lead + (seq, embed_dim), jnp.float32)
    value = jax.random.normal(k4, lead + (seq, embed_dim), jnp.float32)

    ref_out, ref_w = _reference(query, key, value, params, num_heads)

    # 1) f32 compute path with attention weights; block_b=4 with B=6 exercises
    #    batch padding + a multi-step parallel grid.
    out_f32, w_f32 = multiheaded_attention(
        query, key, value, params, num_heads,
        need_weights=True, block_b=4, compute_dtype=jnp.float32)
    out_f32 = jax.block_until_ready(out_f32)
    w_f32 = jax.block_until_ready(w_f32)
    assert out_f32.shape == lead + (seq, embed_dim)
    assert w_f32.shape == lead + (seq, seq)
    # Tolerance slightly looser than f32 roundoff because softmax
    # normalization uses the approximate EUP reciprocal.
    assert jnp.allclose(out_f32, ref_out, atol=5e-3, rtol=5e-3)
    assert jnp.allclose(w_f32, ref_w, atol=5e-3, rtol=5e-3)

    # 2) Default bf16 MXU path, need_weights=False, auto block_b / VMEM budget.
    #    Mixed-precision drift vs the f32 reference -> looser tolerance.
    out_bf16, w_none = multiheaded_attention(
        query, key, value, params, num_heads, need_weights=False)
    out_bf16 = jax.block_until_ready(out_bf16)
    assert w_none is None
    assert out_bf16.shape == lead + (seq, embed_dim)
    assert jnp.allclose(out_bf16, ref_out, atol=1e-1, rtol=1e-1)

    print("KERNEL_OK")
</pallas_src>

<mosaic_0001>
module attributes {stable_mosaic.version = 11 : i64} {
  func.func @_mha_kernel(%arg0: i32, %arg1: memref<4x8x32xf32, #tpu.memory_space<vmem>>, %arg2: memref<4x8x32xf32, #tpu.memory_space<vmem>>, %arg3: memref<4x8x32xf32, #tpu.memory_space<vmem>>, %arg4: memref<32x32xf32, #tpu.memory_space<vmem>>, %arg5: memref<32x32xf32, #tpu.memory_space<vmem>>, %arg6: memref<32x32xf32, #tpu.memory_space<vmem>>, %arg7: memref<1x32xf32, #tpu.memory_space<vmem>>, %arg8: memref<1x32xf32, #tpu.memory_space<vmem>>, %arg9: memref<1x32xf32, #tpu.memory_space<vmem>>, %arg10: memref<32x32xf32, #tpu.memory_space<vmem>>, %arg11: memref<1x32xf32, #tpu.memory_space<vmem>>, %arg12: memref<4x8x32xf32, #tpu.memory_space<vmem>>, %arg13: memref<4x8x8xf32, #tpu.memory_space<vmem>>, %arg14: memref<32x32xf32, #tpu.memory_space<vmem>>) attributes {dimension_semantics = [#tpu.dimension_semantics<parallel>], iteration_bounds = array<i64: 2>, scalar_prefetch = 0 : i64, scratch_operands = 1 : i64, tpu.core_type = #tpu.core_type<tc>, window_params = [{transform_indices = @transform_0, window_bounds = array<i64: 4, 8, 32>}, {transform_indices = @transform_1, window_bounds = array<i64: 4, 8, 32>}, {transform_indices = @transform_2, window_bounds = array<i64: 4, 8, 32>}, {pipeline_mode = #tpu.pipeline_mode<synchronous>, transform_indices = @transform_3, window_bounds = array<i64: 32, 32>}, {pipeline_mode = #tpu.pipeline_mode<synchronous>, transform_indices = @transform_4, window_bounds = array<i64: 32, 32>}, {pipeline_mode = #tpu.pipeline_mode<synchronous>, transform_indices = @transform_5, window_bounds = array<i64: 32, 32>}, {pipeline_mode = #tpu.pipeline_mode<synchronous>, transform_indices = @transform_6, window_bounds = array<i64: 1, 32>}, {pipeline_mode = #tpu.pipeline_mode<synchronous>, transform_indices = @transform_7, window_bounds = array<i64: 1, 32>}, {pipeline_mode = #tpu.pipeline_mode<synchronous>, transform_indices = @transform_8, window_bounds = array<i64: 1, 32>}, {pipeline_mode = #tpu.pipeline_mode<synchronous>, transform_indices = @transform_9, window_bounds = array<i64: 32, 32>}, {pipeline_mode = #tpu.pipeline_mode<synchronous>, transform_indices = @transform_10, window_bounds = array<i64: 1, 32>}, {transform_indices = @transform_11, window_bounds = array<i64: 4, 8, 32>}, {transform_indices = @transform_12, window_bounds = array<i64: 4, 8, 8>}]} {
    %c0 = arith.constant 0 : index
    %c0_0 = arith.constant 0 : index
    %c0_1 = arith.constant 0 : index
    %0 = vector.load %arg1[%c0, %c0_0, %c0_1] : memref<4x8x32xf32, #tpu.memory_space<vmem>>, vector<4x8x32xf32>
    %1 = vector.shape_cast %0 : vector<4x8x32xf32> to vector<32x32xf32>
    %c0_2 = arith.constant 0 : index
    %c0_3 = arith.constant 0 : index
    %2 = vector.load %arg4[%c0_2, %c0_3] : memref<32x32xf32, #tpu.memory_space<vmem>>, vector<32x32xf32>
    %cst = arith.constant dense<0.000000e+00> : vector<32x32xf32>
    %3 = tpu.matmul %1, %2, %cst {dimension_numbers = #tpu.dot_dimension_numbers<[1], [0], [0], [1], [0, 0, 1, 1], [], []>} : vector<32x32xf32>, vector<32x32xf32>, vector<32x32xf32> -> vector<32x32xf32>
    %c0_4 = arith.constant 0 : index
    %c0_5 = arith.constant 0 : index
    %4 = vector.load %arg7[%c0_4, %c0_5] : memref<1x32xf32, #tpu.memory_space<vmem>>, vector<1x32xf32>
    %5 = vector.broadcast %4 : vector<1x32xf32> to vector<32x32xf32>
    %6 = arith.addf %3, %5 : vector<32x32xf32>
    %c0_6 = arith.constant 0 : index
    %c0_7 = arith.constant 0 : index
    %c0_8 = arith.constant 0 : index
    %7 = vector.load %arg2[%c0_6, %c0_7, %c0_8] : memref<4x8x32xf32, #tpu.memory_space<vmem>>, vector<4x8x32xf32>
    %8 = vector.shape_cast %7 : vector<4x8x32xf32> to vector<32x32xf32>
    %c0_9 = arith.constant 0 : index
    %c0_10 = arith.constant 0 : index
    %9 = vector.load %arg5[%c0_9, %c0_10] : memref<32x32xf32, #tpu.memory_space<vmem>>, vector<32x32xf32>
    %cst_11 = arith.constant dense<0.000000e+00> : vector<32x32xf32>
    %10 = tpu.matmul %8, %9, %cst_11 {dimension_numbers = #tpu.dot_dimension_numbers<[1], [0], [0], [1], [0, 0, 1, 1], [], []>} : vector<32x32xf32>, vector<32x32xf32>, vector<32x32xf32> -> vector<32x32xf32>
    %c0_12 = arith.constant 0 : index
    %c0_13 = arith.constant 0 : index
    %11 = vector.load %arg8[%c0_12, %c0_13] : memref<1x32xf32, #tpu.memory_space<vmem>>, vector<1x32xf32>
    %12 = vector.broadcast %11 : vector<1x32xf32> to vector<32x32xf32>
    %13 = arith.addf %10, %12 : vector<32x32xf32>
    %c0_14 = arith.constant 0 : index
    %c0_15 = arith.constant 0 : index
    %c0_16 = arith.constant 0 : index
    %14 = vector.load %arg3[%c0_14, %c0_15, %c0_16] : memref<4x8x32xf32, #tpu.memory_space<vmem>>, vector<4x8x32xf32>
    %15 = vector.shape_cast %14 : vector<4x8x32xf32> to vector<32x32xf32>
    %c0_17 = arith.constant 0 : index
    %c0_18 = arith.constant 0 : index
    %16 = vector.load %arg6[%c0_17, %c0_18] : memref<32x32xf32, #tpu.memory_space<vmem>>, vector<32x32xf32>
    %cst_19 = arith.constant dense<0.000000e+00> : vector<32x32xf32>
    %17 = tpu.matmul %15, %16, %cst_19 {dimension_numbers = #tpu.dot_dimension_numbers<[1], [0], [0], [1], [0, 0, 1, 1], [], []>} : vector<32x32xf32>, vector<32x32xf32>, vector<32x32xf32> -> vector<32x32xf32>
    %c0_20 = arith.constant 0 : index
    %c0_21 = arith.constant 0 : index
    %18 = vector.load %arg9[%c0_20, %c0_21] : memref<1x32xf32, #tpu.memory_space<vmem>>, vector<1x32xf32>
    %19 = vector.broadcast %18 : vector<1x32xf32> to vector<32x32xf32>
    %20 = arith.addf %17, %19 : vector<32x32xf32>
    %21 = vector.shape_cast %6 : vector<32x32xf32> to vector<4x8x32xf32>
    %22 = vector.shape_cast %13 : vector<32x32xf32> to vector<4x8x32xf32>
    %23 = vector.shape_cast %20 : vector<32x32xf32> to vector<4x8x32xf32>
    %cst_22 = arith.constant 0.000000e+00 : f32
    %24 = vector.broadcast %cst_22 : f32 to vector<4x8x8xf32>
    %25 = vector.extract_strided_slice %21 {offsets = [0, 0, 0], sizes = [4, 8, 8], strides = [1, 1, 1]} : vector<4x8x32xf32> to vector<4x8x8xf32>
    %26 = vector.extract_strided_slice %22 {offsets = [0, 0, 0], sizes = [4, 8, 8], strides = [1, 1, 1]} : vector<4x8x32xf32> to vector<4x8x8xf32>
    %27 = vector.extract_strided_slice %23 {offsets = [0, 0, 0], sizes = [4, 8, 8], strides = [1, 1, 1]} : vector<4x8x32xf32> to vector<4x8x8xf32>
    "tpu.trace_start"() <{level = 10 : i32, message = "bqd,bkd->bqk"}> : () -> ()
    %cst_23 = arith.constant dense<0.000000e+00> : vector<4x8x8xf32>
    %28 = tpu.matmul %25, %26, %cst_23 {dimension_numbers = #tpu.dot_dimension_numbers<[2], [2], [1], [1], [0, 0, 0, 1, 1, 1], [0], [0]>} : vector<4x8x8xf32>, vector<4x8x8xf32>, vector<4x8x8xf32> -> vector<4x8x8xf32>
    "tpu.trace_stop"() : () -> ()
    %cst_24 = arith.constant dense<0xFF800000> : vector<4x8xf32>
    %29 = vector.multi_reduction <maximumf>, %28, %cst_24 [2] : vector<4x8x8xf32> to vector<4x8xf32>
    %30 = vector.shape_cast %29 : vector<4x8xf32> to vector<4x8x1xf32>
    %31 = vector.broadcast %30 : vector<4x8x1xf32> to vector<4x8x8xf32>
    %32 = arith.subf %28, %31 : vector<4x8x8xf32>
    %33 = math.exp %32 : vector<4x8x8xf32>
    %cst_25 = arith.constant dense<0.000000e+00> : vector<4x8xf32>
    %34 = vector.multi_reduction <add>, %33, %cst_25 [2] : vector<4x8x8xf32> to vector<4x8xf32>
    %35 = vector.shape_cast %34 : vector<4x8xf32> to vector<4x8x1xf32>
    %36 = tpu.reciprocal %35 {approx = true} : vector<4x8x1xf32> -> vector<4x8x1xf32>
    %37 = vector.broadcast %36 : vector<4x8x1xf32> to vector<4x8x8xf32>
    %38 = arith.mulf %33, %37 : vector<4x8x8xf32>
    "tpu.trace_start"() <{level = 10 : i32, message = "bqk,bkd->bqd"}> : () -> ()
    %cst_26 = arith.constant dense<0.000000e+00> : vector<4x8x8xf32>
    %39 = tpu.matmul %38, %27, %cst_26 {dimension_numbers = #tpu.dot_dimension_numbers<[2], [1], [1], [2], [0, 0, 0, 1, 1, 2], [0], [0]>} : vector<4x8x8xf32>, vector<4x8x8xf32>, vector<4x8x8xf32> -> vector<4x8x8xf32>
    "tpu.trace_stop"() : () -> ()
    %40 = vector.shape_cast %39 : vector<4x8x8xf32> to vector<32x8xf32>
    %c0_27 = arith.constant 0 : index
    %c0_28 = arith.constant 0 : index
    %41 = vector.load %arg14[%c0_27, %c0_28] : memref<32x32xf32, #tpu.memory_space<vmem>>, vector<32x8xf32>
    tpu.vector_store %arg14[%c0_27, %c0_28], %40 {strides = array<i32>} : memref<32x32xf32, #tpu.memory_space<vmem>>, vector<32x8xf32>,
    %42 = arith.addf %24, %38 : vector<4x8x8xf32>
    %43 = vector.extract_strided_slice %21 {offsets = [0, 0, 8], sizes = [4, 8, 8], strides = [1, 1, 1]} : vector<4x8x32xf32> to vector<4x8x8xf32>
    %44 = vector.extract_strided_slice %22 {offsets = [0, 0, 8], sizes = [4, 8, 8], strides = [1, 1, 1]} : vector<4x8x32xf32> to vector<4x8x8xf32>
    %45 = vector.extract_strided_slice %23 {offsets = [0, 0, 8], sizes = [4, 8, 8], strides = [1, 1, 1]} : vector<4x8x32xf32> to vector<4x8x8xf32>
    "tpu.trace_start"() <{level = 10 : i32, message = "bqd,bkd->bqk"}> : () -> ()
    %cst_29 = arith.constant dense<0.000000e+00> : vector<4x8x8xf32>
    %46 = tpu.matmul %43, %44, %cst_29 {dimension_numbers = #tpu.dot_dimension_numbers<[2], [2], [1], [1], [0, 0, 0, 1, 1, 1], [0], [0]>} : vector<4x8x8xf32>, vector<4x8x8xf32>, vector<4x8x8xf32> -> vector<4x8x8xf32>
    "tpu.trace_stop"() : () -> ()
    %cst_30 = arith.constant dense<0xFF800000> : vector<4x8xf32>
    %47 = vector.multi_reduction <maximumf>, %46, %cst_30 [2] : vector<4x8x8xf32> to vector<4x8xf32>
    %48 = vector.shape_cast %47 : vector<4x8xf32> to vector<4x8x1xf32>
    %49 = vector.broadcast %48 : vector<4x8x1xf32> to vector<4x8x8xf32>
    %50 = arith.subf %46, %49 : vector<4x8x8xf32>
    %51 = math.exp %50 : vector<4x8x8xf32>
    %cst_31 = arith.constant dense<0.000000e+00> : vector<4x8xf32>
    %52 = vector.multi_reduction <add>, %51, %cst_31 [2] : vector<4x8x8xf32> to vector<4x8xf32>
    %53 = vector.shape_cast %52 : vector<4x8xf32> to vector<4x8x1xf32>
    %54 = tpu.reciprocal %53 {approx = true} : vector<4x8x1xf32> -> vector<4x8x1xf32>
    %55 = vector.broadcast %54 : vector<4x8x1xf32> to vector<4x8x8xf32>
    %56 = arith.mulf %51, %55 : vector<4x8x8xf32>
    "tpu.trace_start"() <{level = 10 : i32, message = "bqk,bkd->bqd"}> : () -> ()
    %cst_32 = arith.constant dense<0.000000e+00> : vector<4x8x8xf32>
    %57 = tpu.matmul %56, %45, %cst_32 {dimension_numbers = #tpu.dot_dimension_numbers<[2], [1], [1], [2], [0, 0, 0, 1, 1, 2], [0], [0]>} : vector<4x8x8xf32>, vector<4x8x8xf32>, vector<4x8x8xf32> -> vector<4x8x8xf32>
    "tpu.trace_stop"() : () -> ()
    %58 = vector.shape_cast %57 : vector<4x8x8xf32> to vector<32x8xf32>
    %c0_33 = arith.constant 0 : index
    %c8 = arith.constant 8 : index
    %59 = vector.load %arg14[%c0_33, %c8] : memref<32x32xf32, #tpu.memory_space<vmem>>, vector<32x8xf32>
    tpu.vector_store %arg14[%c0_33, %c8], %58 {strides = array<i32>} : memref<32x32xf32, #tpu.memory_space<vmem>>, vector<32x8xf32>,
    %60 = arith.addf %42, %56 : vector<4x8x8xf32>
    %61 = vector.extract_strided_slice %21 {offsets = [0, 0, 16], sizes = [4, 8, 8], strides = [1, 1, 1]} : vector<4x8x32xf32> to vector<4x8x8xf32>
    %62 = vector.extract_strided_slice %22 {offsets = [0, 0, 16], sizes = [4, 8, 8], strides = [1, 1, 1]} : vector<4x8x32xf32> to vector<4x8x8xf32>
    %63 = vector.extract_strided_slice %23 {offsets = [0, 0, 16], sizes = [4, 8, 8], strides = [1, 1, 1]} : vector<4x8x32xf32> to vector<4x8x8xf32>
    "tpu.trace_start"() <{level = 10 : i32, message = "bqd,bkd->bqk"}> : () -> ()
    %cst_34 = arith.constant dense<0.000000e+00> : vector<4x8x8xf32>
    %64 = tpu.matmul %61, %62, %cst_34 {dimension_numbers = #tpu.dot_dimension_numbers<[2], [2], [1], [1], [0, 0, 0, 1, 1, 1], [0], [0]>} : vector<4x8x8xf32>, vector<4x8x8xf32>, vector<4x8x8xf32> -> vector<4x8x8xf32>
    "tpu.trace_stop"() : () -> ()
    %cst_35 = arith.constant dense<0xFF800000> : vector<4x8xf32>
    %65 = vector.multi_reduction <maximumf>, %64, %cst_35 [2] : vector<4x8x8xf32> to vector<4x8xf32>
    %66 = vector.shape_cast %65 : vector<4x8xf32> to vector<4x8x1xf32>
    %67 = vector.broadcast %66 : vector<4x8x1xf32> to vector<4x8x8xf32>
    %68 = arith.subf %64, %67 : vector<4x8x8xf32>
    %69 = math.exp %68 : vector<4x8x8xf32>
    %cst_36 = arith.constant dense<0.000000e+00> : vector<4x8xf32>
    %70 = vector.multi_reduction <add>, %69, %cst_36 [2] : vector<4x8x8xf32> to vector<4x8xf32>
    %71 = vector.shape_cast %70 : vector<4x8xf32> to vector<4x8x1xf32>
    %72 = tpu.reciprocal %71 {approx = true} : vector<4x8x1xf32> -> vector<4x8x1xf32>
    %73 = vector.broadcast %72 : vector<4x8x1xf32> to vector<4x8x8xf32>
    %74 = arith.mulf %69, %73 : vector<4x8x8xf32>
    "tpu.trace_start"() <{level = 10 : i32, message = "bqk,bkd->bqd"}> : () -> ()
    %cst_37 = arith.constant dense<0.000000e+00> : vector<4x8x8xf32>
    %75 = tpu.matmul %74, %63, %cst_37 {dimension_numbers = #tpu.dot_dimension_numbers<[2], [1], [1], [2], [0, 0, 0, 1, 1, 2], [0], [0]>} : vector<4x8x8xf32>, vector<4x8x8xf32>, vector<4x8x8xf32> -> vector<4x8x8xf32>
    "tpu.trace_stop"() : () -> ()
    %76 = vector.shape_cast %75 : vector<4x8x8xf32> to vector<32x8xf32>
    %c0_38 = arith.constant 0 : index
    %c16 = arith.constant 16 : index
    %77 = vector.load %arg14[%c0_38, %c16] : memref<32x32xf32, #tpu.memory_space<vmem>>, vector<32x8xf32>
    tpu.vector_store %arg14[%c0_38, %c16], %76 {strides = array<i32>} : memref<32x32xf32, #tpu.memory_space<vmem>>, vector<32x8xf32>,
    %78 = arith.addf %60, %74 : vector<4x8x8xf32>
    %79 = vector.extract_strided_slice %21 {offsets = [0, 0, 24], sizes = [4, 8, 8], strides = [1, 1, 1]} : vector<4x8x32xf32> to vector<4x8x8xf32>
    %80 = vector.extract_strided_slice %22 {offsets = [0, 0, 24], sizes = [4, 8, 8], strides = [1, 1, 1]} : vector<4x8x32xf32> to vector<4x8x8xf32>
    %81 = vector.extract_strided_slice %23 {offsets = [0, 0, 24], sizes = [4, 8, 8], strides = [1, 1, 1]} : vector<4x8x32xf32> to vector<4x8x8xf32>
    "tpu.trace_start"() <{level = 10 : i32, message = "bqd,bkd->bqk"}> : () -> ()
    %cst_39 = arith.constant dense<0.000000e+00> : vector<4x8x8xf32>
    %82 = tpu.matmul %79, %80, %cst_39 {dimension_numbers = #tpu.dot_dimension_numbers<[2], [2], [1], [1], [0, 0, 0, 1, 1, 1], [0], [0]>} : vector<4x8x8xf32>, vector<4x8x8xf32>, vector<4x8x8xf32> -> vector<4x8x8xf32>
    "tpu.trace_stop"() : () -> ()
    %cst_40 = arith.constant dense<0xFF800000> : vector<4x8xf32>
    %83 = vector.multi_reduction <maximumf>, %82, %cst_40 [2] : vector<4x8x8xf32> to vector<4x8xf32>
    %84 = vector.shape_cast %83 : vector<4x8xf32> to vector<4x8x1xf32>
    %85 = vector.broadcast %84 : vector<4x8x1xf32> to vector<4x8x8xf32>
    %86 = arith.subf %82, %85 : vector<4x8x8xf32>
    %87 = math.exp %86 : vector<4x8x8xf32>
    %cst_41 = arith.constant dense<0.000000e+00> : vector<4x8xf32>
    %88 = vector.multi_reduction <add>, %87, %cst_41 [2] : vector<4x8x8xf32> to vector<4x8xf32>
    %89 = vector.shape_cast %88 : vector<4x8xf32> to vector<4x8x1xf32>
    %90 = tpu.reciprocal %89 {approx = true} : vector<4x8x1xf32> -> vector<4x8x1xf32>
    %91 = vector.broadcast %90 : vector<4x8x1xf32> to vector<4x8x8xf32>
    %92 = arith.mulf %87, %91 : vector<4x8x8xf32>
    "tpu.trace_start"() <{level = 10 : i32, message = "bqk,bkd->bqd"}> : () -> ()
    %cst_42 = arith.constant dense<0.000000e+00> : vector<4x8x8xf32>
    %93 = tpu.matmul %92, %81, %cst_42 {dimension_numbers = #tpu.dot_dimension_numbers<[2], [1], [1], [2], [0, 0, 0, 1, 1, 2], [0], [0]>} : vector<4x8x8xf32>, vector<4x8x8xf32>, vector<4x8x8xf32> -> vector<4x8x8xf32>
    "tpu.trace_stop"() : () -> ()
    %94 = vector.shape_cast %93 : vector<4x8x8xf32> to vector<32x8xf32>
    %c0_43 = arith.constant 0 : index
    %c24 = arith.constant 24 : index
    %95 = vector.load %arg14[%c0_43, %c24] : memref<32x32xf32, #tpu.memory_space<vmem>>, vector<32x8xf32>
    tpu.vector_store %arg14[%c0_43, %c24], %94 {strides = array<i32>} : memref<32x32xf32, #tpu.memory_space<vmem>>, vector<32x8xf32>,
    %96 = arith.addf %78, %92 : vector<4x8x8xf32>
    %c0_44 = arith.constant 0 : index
    %c0_45 = arith.constant 0 : index
    %97 = vector.load %arg14[%c0_44, %c0_45] : memref<32x32xf32, #tpu.memory_space<vmem>>, vector<32x32xf32>
    %c0_46 = arith.constant 0 : index
    %c0_47 = arith.constant 0 : index
    %98 = vector.load %arg10[%c0_46, %c0_47] : memref<32x32xf32, #tpu.memory_space<vmem>>, vector<32x32xf32>
    %cst_48 = arith.constant dense<0.000000e+00> : vector<32x32xf32>
    %99 = tpu.matmul %97, %98, %cst_48 {dimension_numbers = #tpu.dot_dimension_numbers<[1], [0], [0], [1], [0, 0, 1, 1], [], []>} : vector<32x32xf32>, vector<32x32xf32>, vector<32x32xf32> -> vector<32x32xf32>
    %c0_49 = arith.constant 0 : index
    %c0_50 = arith.constant 0 : index
    %100 = vector.load %arg11[%c0_49, %c0_50] : memref<1x32xf32, #tpu.memory_space<vmem>>, vector<1x32xf32>
    %101 = vector.broadcast %100 : vector<1x32xf32> to vector<32x32xf32>
    %102 = arith.addf %99, %101 : vector<32x32xf32>
    %103 = vector.shape_cast %102 : vector<32x32xf32> to vector<4x8x32xf32>
    %c0_51 = arith.constant 0 : index
    %c0_52 = arith.constant 0 : index
    %c0_53 = arith.constant 0 : index
    %104 = vector.load %arg12[%c0_51, %c0_52, %c0_53] : memref<4x8x32xf32, #tpu.memory_space<vmem>>, vector<4x8x32xf32>
    tpu.vector_store %arg12[%c0_51, %c0_52, %c0_53], %103 {strides = array<i32>} : memref<4x8x32xf32, #tpu.memory_space<vmem>>, vector<4x8x32xf32>,
    %cst_54 = arith.constant 2.500000e-01 : f32
    %105 = vector.broadcast %cst_54 : f32 to vector<4x8x8xf32>
    %106 = arith.mulf %96, %105 : vector<4x8x8xf32>
    %c0_55 = arith.constant 0 : index
    %c0_56 = arith.constant 0 : index
    %c0_57 = arith.constant 0 : index
    %107 = vector.load %arg13[%c0_55, %c0_56, %c0_57] : memref<4x8x8xf32, #tpu.memory_space<vmem>>, vector<4x8x8xf32>
    tpu.vector_store %arg13[%c0_55, %c0_56, %c0_57], %106 {strides = array<i32>} : memref<4x8x8xf32, #tpu.memory_space<vmem>>, vector<4x8x8xf32>,
    return
  }
  func.func @transform_0(%arg0: i32) -> (i32, i32, i32) {
    %c0_i32 = arith.constant 0 : i32
    %c0_i32_0 = arith.constant 0 : i32
    %c0_i32_1 = arith.constant 0 : i32
    return %arg0, %c0_i32, %c0_i32_0 : i32, i32, i32
  }
  func.func @transform_1(%arg0: i32) -> (i32, i32, i32) {
    %c0_i32 = arith.constant 0 : i32
    %c0_i32_0 = arith.constant 0 : i32
    %c0_i32_1 = arith.constant 0 : i32
    return %arg0, %c0_i32, %c0_i32_0 : i32, i32, i32
  }
  func.func @transform_2(%arg0: i32) -> (i32, i32, i32) {
    %c0_i32 = arith.constant 0 : i32
    %c0_i32_0 = arith.constant 0 : i32
    %c0_i32_1 = arith.constant 0 : i32
    return %arg0, %c0_i32, %c0_i32_0 : i32, i32, i32
  }
  func.func @transform_3(%arg0: i32) -> (i32, i32) {
    %c0_i32 = arith.constant 0 : i32
    %c0_i32_0 = arith.constant 0 : i32
    %c0_i32_1 = arith.constant 0 : i32
    return %c0_i32, %c0_i32_0 : i32, i32
  }
  func.func @transform_4(%arg0: i32) -> (i32, i32) {
    %c0_i32 = arith.constant 0 : i32
    %c0_i32_0 = arith.constant 0 : i32
    %c0_i32_1 = arith.constant 0 : i32
    return %c0_i32, %c0_i32_0 : i32, i32
  }
  func.func @transform_5(%arg0: i32) -> (i32, i32) {
    %c0_i32 = arith.constant 0 : i32
    %c0_i32_0 = arith.constant 0 : i32
    %c0_i32_1 = arith.constant 0 : i32
    return %c0_i32, %c0_i32_0 : i32, i32
  }
  func.func @transform_6(%arg0: i32) -> (i32, i32) {
    %c0_i32 = arith.constant 0 : i32
    %c0_i32_0 = arith.constant 0 : i32
    %c0_i32_1 = arith.constant 0 : i32
    return %c0_i32, %c0_i32_0 : i32, i32
  }
  func.func @transform_7(%arg0: i32) -> (i32, i32) {
    %c0_i32 = arith.constant 0 : i32
    %c0_i32_0 = arith.constant 0 : i32
    %c0_i32_1 = arith.constant 0 : i32
    return %c0_i32, %c0_i32_0 : i32, i32
  }
  func.func @transform_8(%arg0: i32) -> (i32, i32) {
    %c0_i32 = arith.constant 0 : i32
    %c0_i32_0 = arith.constant 0 : i32
    %c0_i32_1 = arith.constant 0 : i32
    return %c0_i32, %c0_i32_0 : i32, i32
  }
  func.func @transform_9(%arg0: i32) -> (i32, i32) {
    %c0_i32 = arith.constant 0 : i32
    %c0_i32_0 = arith.constant 0 : i32
    %c0_i32_1 = arith.constant 0 : i32
    return %c0_i32, %c0_i32_0 : i32, i32
  }
  func.func @transform_10(%arg0: i32) -> (i32, i32) {
    %c0_i32 = arith.constant 0 : i32
    %c0_i32_0 = arith.constant 0 : i32
    %c0_i32_1 = arith.constant 0 : i32
    return %c0_i32, %c0_i32_0 : i32, i32
  }
  func.func @transform_11(%arg0: i32) -> (i32, i32, i32) {
    %c0_i32 = arith.constant 0 : i32
    %c0_i32_0 = arith.constant 0 : i32
    %c0_i32_1 = arith.constant 0 : i32
    return %arg0, %c0_i32, %c0_i32_0 : i32, i32, i32
  }
  func.func @transform_12(%arg0: i32) -> (i32, i32, i32) {
    %c0_i32 = arith.constant 0 : i32
    %c0_i32_0 = arith.constant 0 : i32
    %c0_i32_1 = arith.constant 0 : i32
    return %arg0, %c0_i32, %c0_i32_0 : i32, i32, i32
  }
}

</mosaic_0001>

<bundles_post_ra>
// kernel: tpu_custom_call.1
= control target key start
LH: loop header
LB: loop body
LE: loop exit
PB: predicated region body
PF: predicated region fallthrough
CT: control target
= control target key end

     0   :  { %s5863_s0 = inlined_call_operand.hbm [shape: f32[8,8,32], index: 0, kind: input, shape index: {}]   ;;  %s5864_s1 = inlined_call_operand.hbm [shape: f32[8,8,32], index: 1, kind: input, shape index: {}]   ;;  %s5865_s2 = inlined_call_operand.hbm [shape: f32[8,8,32], index: 2, kind: input, shape index: {}]   ;;  %s5866_s3 = inlined_call_operand.hbm [shape: f32[32,32], index: 3, kind: input, shape index: {}]   ;;  %s5867_s4 = inlined_call_operand.hbm [shape: f32[32,32], index: 4, kind: input, shape index: {}]   ;;  %s5868_s5 = inlined_call_operand.hbm [shape: f32[32,32], index: 5, kind: input, shape index: {}]   ;;  %s5869_s6 = inlined_call_operand.vmem [shape: f32[1,32], index: 6, kind: input, shape index: {}]   ;;  %s5870_s7 = inlined_call_operand.vmem [shape: f32[1,32], index: 7, kind: input, shape index: {}]   ;;  %s5871_s8 = inlined_call_operand.hbm [shape: f32[1,32], index: 8, kind: input, shape index: {}]   ;;  %s5872_s9 = inlined_call_operand.vmem [shape: f32[32,32], index: 9, kind: input, shape index: {}]   ;;  %s5873_s10 = inlined_call_operand.vmem [shape: f32[1,32], index: 10, kind: input, shape index: {}]   ;;  %s5874_s11 = inlined_call_operand.hbm [shape: f32[8,8,32], index: 11, kind: output, shape index: {0}]   ;;  %s5875_s12 = inlined_call_operand.hbm [shape: f32[8,8,8], index: 12, kind: output, shape index: {1}]  }
   0x1   :  { %5903 = sst [smem:[#allocation30_spill]] %s5864_s1 }
   0x2   :  { %5904 = sst [smem:[#allocation31_spill]] %s5866_s3 }
   0x3   :  { %5905 = sst [smem:[#allocation32_spill]] %s5868_s5 }
   0x4   :  { %5906 = sst [smem:[#allocation33_spill]] %s5869_s6 }
   0x5   :  { %5907 = sst [smem:[#allocation34_spill]] %s5872_s9 }
   0x6   :  { %5908 = sst [smem:[#allocation35_spill]] %s5873_s10 }
   0x7   :  { %5909 = sst [smem:[#allocation36_spill]] %s5874_s11 }
   0x8   :  { %5910 = sst [smem:[#allocation37_spill]] %s5875_s12 }
   0x9   :  { %18 = vsyncpa [#allocation4], 0 }
   0xa   :  { %20 = vsyncpa [#allocation4 + $0x1], 0 }
   0xb   :  { %21 = vsyncpa [#allocation7], 0 }
   0xc   :  { %23 = vsyncpa [#allocation7 + $0x1], 0 }
   0xd   :  { %24 = vsyncpa [#allocation10], 0 }
   0xe   :  { %25 = vsyncpa [#allocation13], 0 }
   0xf   :  { %26 = vsyncpa [#allocation5], 0 }
  0x10   :  { %28 = vsyncpa [#allocation5 + $0x1], 0 }
  0x11   :  { %29 = vsyncpa [#allocation17], 0 }
  0x12   :  { %31 = vsyncpa [#allocation17 + $0x1], 0  ;;  %s4998_s21 = smov 0   ;;  %s5000_s22 = smov 0  }
  0x13   :  { %s5002_s23 = smov 0   ;;  %s5004_s24 = smov 0  }
  0x14 LB: > { %5911 = sst [smem:[#allocation24_spill]] %s4899_s21  ;;  %s5019_s25 = sadd.s32 4294967295, %s4911_s24   ;;  %s4911_s24 = sphi %s5004_s24, %s5954_s24   ;;  %s4907_s23 = sphi %s5002_s23, %s5958_s23   ;;  %s4903_s22 = sphi %s5000_s22, %s5957_s22   ;;  %s4899_s21 = sphi %s4998_s21, %s5956_s21  }
  0x15   : > { %5912 = sst [smem:[#allocation25_spill]] %s4911_s24  ;;  %s3971_s26 = sadd.s32 4294967294, %s4911_s24  }
  0x16   : > { %p57_p0 = scmp.ne.s32.totalorder %s4903_s22, %s4899_s21  ;;  %p5877_p1 = scmp.eq.s32.totalorder %s5019_s25, 0 }
  0x17   : > { %p307_p3 = scmp.eq.s32.totalorder %s3971_s26, 1  ;;  %p3972_p5 = scmp.ge.s32.totalorder %s4911_s24, 1 }
  0x18   : > { %p5028_p4 = por %p5877_p1, %p57_p0  ;;  %p340_p7 = scmp.lt.s32.totalorder %s4911_s24, 3 }
  0x19   : > { %p5033_p6 = por %p307_p3, %p57_p0  ;;  %s4913_s30 = smov [#allocation9]  }
  0x1a   : > { %s5913_s27 = scalar_select %p5028_p4, 1, 0 }
  0x1b   : > { %s5914_s28 = scalar_select %p5033_p6, 1, 0 }
  0x1c   : > { %p5038_p8 = pnand %p3972_p5, %p340_p7  ;;  %s352_s13 = sshll.u32 %s4913_s30, 4  ;;  %s5042_s13 = int_to_ptr.vmem [resolvable:$true] %s352_s13 }
  0x1d   : > { %5915 = sst [smem:[#allocation26_spill]] %s5914_s28  ;;  %s4914_s15 = smov [#allocation12]  }
  0x1e   : > { %s5916_s29 = scalar_select %p5038_p8, 1, 0 }
  0x1f   : > { %p4448_p9 = pneg %p5038_p8  ;;  %s378_s16 = sshll.u32 %s4914_s15, 4  ;;  %s5053_s16 = int_to_ptr.vmem [resolvable:$true] %s378_s16 }
  0x20   : > { %s5918_s3 = sld [smem:[#allocation31_spill]] }
  0x21   : > { %p5049_p11 = pnand %p4448_p9, %p5877_p1 }
  0x23   : > { %s5917_s14 = scalar_select %p5049_p11, 1, 0 }
  0x24   : > { %p5063_p13 = pneg %p5049_p11 }
  0x26   : > { %s4599_s19 = scalar_lea.hbm %s5918_s3, 512 }
  0x27   : > { %p4600_p12 = scmp.ne.s32.totalorder %s5918_s3, %s4599_s19  ;;  %p4606_p5 = scmp.lt.u32.totalorder %s4599_s19, %s5918_s3 }
  0x28   : > { %s5919_s30 = scalar_select %p5063_p13, 1, 0 }
  0x29   : > { %p4602_p0 = pnand %p5063_p13, %p4600_p12 }
  0x2b   : > { %p4603_p3 = pneg %p4602_p0 }
  0x2d   : > { %p4608_p7 = pnand %p4606_p5, %p4603_p3 }
  0x2f   : > { %4611 = shalt.err (!%p4608_p7)
}
  0x30   : > { %s4612_s17 = scalar_lea.vmem %s5042_s13, 512  ;;  %p4620_p2 = scmp.lt.s32.totalorder %s5042_s13, %s5042_s13 }
  0x31   : > { %p4613_p9 = scmp.ne.s32.totalorder %s5042_s13, %s4612_s17  ;;  %p4621_p6 = scmp.lt.s32.totalorder %s4612_s17, %s4612_s17 }
  0x33   : > { %p4615_p10 = pnand %p4613_p9, %p5063_p13  ;;  %p4622_p12 = por %p4621_p6, %p4620_p2 }
  0x35   : > { %p4616_p1 = pneg %p4615_p10 }
  0x37   : > { %p4623_p0 = pnand %p4622_p12, %p4616_p1 }
  0x39   : > { %4626 = shalt.err (!%p4623_p0)
}
  0x3a   : > { %s5882_s18 = smov 128   ;;  %s5884_s28 = smov 8  }
  0x3b   : > { %4451 = dma.hbm_to_vmem [thread:$0]  (!%p5049_p11), %s5918_s3, 512, %s5042_s13, [#allocation10], %s5882_s18, %s5882_s18, %s5884_s28  }
  0x3c   : > { %s5920_s5 = sld [smem:[#allocation32_spill]] }
  0x42   : > { %s4627_s17 = scalar_lea.hbm %s5920_s5, 512 }
  0x43   : > { %p4628_p1 = scmp.ne.s32.totalorder %s5920_s5, %s4627_s17  ;;  %p4634_p10 = scmp.lt.u32.totalorder %s4627_s17, %s5920_s5 }
  0x45   : > { %p4630_p2 = pnand %p4628_p1, %p5063_p13 }
  0x47   : > { %p4631_p6 = pneg %p4630_p2 }
  0x49   : > { %p4636_p3 = pnand %p4634_p10, %p4631_p6 }
  0x4b   : > { %4639 = shalt.err (!%p4636_p3)
}
  0x4c   : > { %s4640_s13 = scalar_lea.vmem %s5053_s16, 512  ;;  %p4648_p12 = scmp.lt.s32.totalorder %s5053_s16, %s5053_s16 }
  0x4d   : > { %p4641_p5 = scmp.ne.s32.totalorder %s5053_s16, %s4640_s13  ;;  %p4649_p0 = scmp.lt.s32.totalorder %s4640_s13, %s4640_s13 }
  0x4f   : > { %p4643_p7 = pnand %p4641_p5, %p5063_p13  ;;  %p4650_p1 = por %p4649_p0, %p4648_p12 }
  0x51   : > { %p4644_p9 = pneg %p4643_p7 }
  0x53   : > { %p4651_p2 = pnand %p4650_p1, %p4644_p9 }
  0x55   : > { %4654 = shalt.err (!%p4651_p2)
}
  0x56   : > { %4457 = dma.hbm_to_vmem [thread:$0]  (!%p5049_p11), %s5920_s5, 512, %s5053_s16, [#allocation13], %s5882_s18, %s5882_s18, %s5884_s28  }
  0x57   : > { %s5114_s12 = sadd.s32 1, %s4911_s24   ;;  %s44_s21 = sadd.s32 1, %s4907_s23 }
  0x58   : > { %5921 = sst [smem:[#allocation27_spill]] %s5114_s12  ;;  %s41_s19 = ssub.s32 %s4911_s24, %s5114_s12 }
  0x59   : > { %p51_p6 = scmp.ne.s32.totalorder %s4907_s23, %s4903_s22  ;;  %p42_p10 = scmp.eq.s32.totalorder %s41_s19, 0 }
  0x5a   : > { %p52_p3 = scmp.eq.s32.totalorder %s4911_s24, 0  ;;  %p5922_p5 = scmp.eq.s32.totalorder %s5019_s25, 1 }
  0x5b   : > { %p4482_p9 = scmp.lt.s32.totalorder %s4911_s24, 2  ;;  %s5881_s15 = sand.u32 1, %s4907_s23  }
  0x5c   : > { %p5124_p7 = por %p5922_p5, %p51_p6  ;;  %p53_p12 = por %p52_p3, %p51_p6 }
  0x5d   : > { %s5130_s26 = scalar_select %p42_p10, %s4907_s23, %s44_s21  }
  0x5e   : > { %s5923_s20 = scalar_select %p5124_p7, 1, 0 }
  0x5f   : > { %5925 = sst [smem:[#allocation29_spill]] %s5130_s26  ;;  %s5135_s16 = sshll.u32 %s5881_s15, 5 }
  0x60   : > { %5924 = sst [smem:[#allocation28_spill]] %s5923_s20  ;;  %s5138_s17 = sshll.u32 %s4911_s24, 9 }
  0x61   : > { %p5140_p0 = pnand %p4482_p9, %p53_p12  ;;  %s436_s10 = sand.u32 1, %s4911_s24  }
  0x62   : > { %s5927_s1 = sld [smem:[#allocation30_spill]]  ;;  %s440_s15 = scalar_lea.vmem [#allocation6], %s5135_s16 }
  0x63   : > { %s5926_s13 = scalar_select %p5140_p0, 1, 0 }
  0x64   : > { %s447_s18 = sshll.u32 %s440_s15, 4  ;;  %s4917_s28 = smov [#allocation11]   ;;  %s5152_s18 = int_to_ptr.vmem [resolvable:$true] %s447_s18 }
  0x65   : > { %s5154_s3 = sshll.u32 %s4917_s28, 4  ;;  %s5156_s5 = scalar_lea.sflag [#allocation7], %s436_s10  ;;  %s366_s3 = int_to_ptr.vmem [resolvable:$true] %s5154_s3 }
  0x66   : > { %p5162_p2 = pneg %p5140_p0 }
  0x68   : > { %s5149_s21 = scalar_lea.hbm %s5927_s1, %s5138_s17  ;;  %s4660_s12 = scalar_lea.hbm %s5927_s1, 1024 }
  0x69   : > { %s4655_s26 = scalar_lea.hbm %s5149_s21, 512  ;;  %p4661_p3 = scmp.lt.u32.totalorder %s5149_s21, %s5927_s1 }
  0x6a   : > { %p4656_p1 = scmp.ne.s32.totalorder %s5149_s21, %s4655_s26  ;;  %p4662_p5 = scmp.lt.u32.totalorder %s4660_s12, %s4655_s26 }
  0x6b   : > { %s5928_s11 = scalar_select %p5162_p2, 1, 0 }
  0x6c   : > { %p4658_p6 = pnand %p5162_p2, %p4656_p1  ;;  %p4663_p9 = por %p4662_p5, %p4661_p3 }
  0x6d   : > { %p4664_p12 = scmp.lt.u32.totalorder %s4655_s26, %s5149_s21 }
  0x6e   : > { %p4659_p10 = pneg %p4658_p6 }
  0x6f   : > { %p4665_p7 = por %p4664_p12, %p4663_p9 }
  0x71   : > { %p4666_p4 = pnand %p4665_p7, %p4659_p10 }
  0x73   : > { %4669 = shalt.err (!%p4666_p4)
}
  0x74   : > { %s4670_s10 = scalar_lea.vmem %s5152_s18, 512  ;;  %s4918_s19 = smov [#allocation6]  }
  0x75   : > { %p4671_p1 = scmp.ne.s32.totalorder %s5152_s18, %s4670_s10  ;;  %s4675_s15 = sshll.u32 %s4918_s19, 4  ;;  %s4676_s15 = int_to_ptr.vmem [resolvable:$false] %s4675_s15 }
  0x76   : > { %s4677_s24 = scalar_lea.vmem %s4676_s15, 1024  ;;  %p4678_p11 = scmp.lt.s32.totalorder %s5152_s18, %s4676_s15 }
  0x77   : > { %p4673_p6 = pnand %p4671_p1, %p5162_p2  ;;  %p4679_p13 = scmp.lt.s32.totalorder %s4677_s24, %s4670_s10 }
  0x79   : > { %p4674_p8 = pneg %p4673_p6  ;;  %p4680_p3 = por %p4679_p13, %p4678_p11 }
  0x7b   : > { %p4681_p5 = pnand %p4680_p3, %p4674_p8 }
  0x7d   : > { %4684 = shalt.err (!%p4681_p5)
}
  0x7e   : > { %s5929_s12 = smov 8   ;;  %s5930_s26 = smov 128  }
  0x7f   : > { %4467 = dma.hbm_to_vmem [thread:$0]  (!%p5140_p0), %s5149_s21, 512, %s5152_s18, %s5156_s5, %s5930_s26, %s5930_s26, %s5929_s12  }
  0x80   : > { %s4685_s15 = scalar_lea.hbm %s5867_s4, 512  ;;  %p5931_p8 = scmp.ne.s32.totalorder %s5919_s30, 0 }
  0x81   : > { %p4686_p4 = scmp.ne.s32.totalorder %s5867_s4, %s4685_s15  ;;  %p4692_p7 = scmp.lt.u32.totalorder %s4685_s15, %s5867_s4 }
  0x83   : > { %p4688_p11 = pnand %p4686_p4, %p5931_p8 }
  0x85   : > { %p4689_p13 = pneg %p4688_p11 }
  0x87   : > { %p4694_p10 = pnand %p4692_p7, %p4689_p13 }
  0x89   : > { %4697 = shalt.err (!%p4694_p10)
}
  0x8a   : > { %s4698_s9 = scalar_lea.vmem %s366_s3, 512  ;;  %p4706_p6 = scmp.lt.s32.totalorder %s366_s3, %s366_s3 }
  0x8b   : > { %p4699_p9 = scmp.ne.s32.totalorder %s366_s3, %s4698_s9  ;;  %p4707_p3 = scmp.lt.s32.totalorder %s4698_s9, %s4698_s9 }
  0x8d   : > { %p4701_p12 = pnand %p4699_p9, %p5931_p8  ;;  %p4708_p5 = por %p4707_p3, %p4706_p6 }
  0x8f   : > { %p4702_p1 = pneg %p4701_p12 }
  0x91   : > { %p4709_p0 = pnand %p4708_p5, %p4702_p1 }
  0x93   : > { %4712 = shalt.err (!%p4709_p0)
}
  0x94   : > { %p5932_p4 = scmp.ne.s32.totalorder %s5917_s14, 0  ;;  %s4919_s20 = smov [#allocation14]  }
  0x95   : > { %s398_s21 = sshll.u32 %s4919_s20, 4  ;;  %s4713_s9 = scalar_lea.hbm %s5871_s8, 16  ;;  %s399_s21 = int_to_ptr.vmem [resolvable:$true] %s398_s21 }
  0x96   : > { %4454 = dma.hbm_to_vmem [thread:$0]  (!%p5932_p4), %s5867_s4, 512, %s366_s3, [#allocation10], %s5930_s26, %s5930_s26, %s5929_s12  }
  0x97   : > { %p4714_p0 = scmp.ne.s32.totalorder %s5871_s8, %s4713_s9  ;;  %p4720_p7 = scmp.lt.u32.totalorder %s4713_s9, %s5871_s8 }
  0x99   : > { %p4716_p11 = pnand %p4714_p0, %p5931_p8 }
  0x9b   : > { %p4717_p13 = pneg %p4716_p11 }
  0x9d   : > { %p4722_p10 = pnand %p4720_p7, %p4717_p13 }
  0x9f   : > { %4725 = shalt.err (!%p4722_p10)
}
  0xa0   : > { %s4726_s3 = scalar_lea.vmem %s399_s21, 16  ;;  %s4733_s1 = scalar_lea.vmem %s399_s21, 32 }
  0xa1   : > { %p4727_p9 = scmp.ne.s32.totalorder %s399_s21, %s4726_s3  ;;  %p4734_p6 = scmp.lt.s32.totalorder %s399_s21, %s399_s21 }
  0xa2   : > { %p4735_p3 = scmp.lt.s32.totalorder %s4733_s1, %s4726_s3 }
  0xa3   : > { %p4729_p12 = pnand %p4727_p9, %p5931_p8 }
  0xa4   : > { %p4736_p5 = por %p4735_p3, %p4734_p6 }
  0xa5   : > { %p4730_p1 = pneg %p4729_p12 }
  0xa7   : > { %p4737_p2 = pnand %p4736_p5, %p4730_p1 }
  0xa9   : > { %4740 = shalt.err (!%p4737_p2)
}
  0xaa   : > { %4460 = dma.hbm_to_vmem [thread:$0]  (!%p5932_p4), %s5871_s8, 16, %s399_s21, [#allocation13]  }
  0xab   : > { %s5233_s28 = scalar_lea.hbm %s5863_s0, %s5138_s17  ;;  %s419_s19 = scalar_lea.vmem [#allocation3], %s5135_s16 }
  0xac   : > { %s426_s9 = sshll.u32 %s419_s19, 4  ;;  %s5933_s14 = sand.u32 1, %s4907_s23   ;;  %s5236_s9 = int_to_ptr.vmem [resolvable:$true] %s426_s9 }
  0xad   : > { %s5240_s15 = scalar_lea.sflag [#allocation4], %s5933_s14  ;;  %s4741_s10 = scalar_lea.hbm %s5233_s28, 512 }
  0xae   : > { %p4742_p2 = scmp.ne.s32.totalorder %s5233_s28, %s4741_s10  ;;  %p5934_p8 = scmp.ne.s32.totalorder %s5928_s11, 0 }
  0xaf   : > { %s4746_s3 = scalar_lea.hbm %s5863_s0, 1024  ;;  %p4747_p11 = scmp.lt.u32.totalorder %s5233_s28, %s5863_s0 }
  0xb0   : > { %p4744_p4 = pnand %p4742_p2, %p5934_p8  ;;  %p4748_p13 = scmp.lt.u32.totalorder %s4746_s3, %s4741_s10 }
  0xb1   : > { %p4750_p10 = scmp.lt.u32.totalorder %s4741_s10, %s5233_s28 }
  0xb2   : > { %p4745_p0 = pneg %p4744_p4  ;;  %p4749_p7 = por %p4748_p13, %p4747_p11 }
  0xb4   : > { %p4751_p9 = por %p4750_p10, %p4749_p7 }
  0xb6   : > { %p4752_p12 = pnand %p4751_p9, %p4745_p0 }
  0xb8   : > { %4755 = shalt.err (!%p4752_p12)
}
  0xb9   : > { %s4756_s20 = scalar_lea.vmem %s5236_s9, 512  ;;  %s4920_s6 = smov [#allocation3]  }
  0xba   : > { %p4757_p1 = scmp.ne.s32.totalorder %s5236_s9, %s4756_s20  ;;  %s4761_s30 = sshll.u32 %s4920_s6, 4  ;;  %s4762_s30 = int_to_ptr.vmem [resolvable:$false] %s4761_s30 }
  0xbb   : > { %s4763_s19 = scalar_lea.vmem %s4762_s30, 1024  ;;  %p4764_p5 = scmp.lt.s32.totalorder %s5236_s9, %s4762_s30 }
  0xbc   : > { %p4759_p6 = pnand %p4757_p1, %p5934_p8  ;;  %p4765_p2 = scmp.lt.s32.totalorder %s4763_s19, %s4756_s20 }
  0xbe   : > { %p4760_p3 = pneg %p4759_p6  ;;  %p4766_p4 = por %p4765_p2, %p4764_p5 }
  0xc0   : > { %p4767_p11 = pnand %p4766_p4, %p4760_p3 }
  0xc2   : > { %4770 = shalt.err (!%p4767_p11)
}
  0xc3   : > { %p5935_p0 = scmp.ne.s32.totalorder %s5926_s13, 0  ;;  %s5271_s21 = scalar_lea.hbm %s5865_s2, %s5138_s17 }
  0xc4   : > { %s461_s24 = scalar_lea.vmem [#allocation8], %s5135_s16  ;;  %s4771_s1 = scalar_lea.hbm %s5271_s21, 512 }
  0xc5   : > { %4464 = dma.hbm_to_vmem [thread:$0]  (!%p5935_p0), %s5233_s28, 512, %s5236_s9, %s5240_s15, %s5930_s26, %s5930_s26, %s5929_s12  }
  0xc6   : > { %s468_s3 = sshll.u32 %s461_s24, 4  ;;  %p4772_p13 = scmp.ne.s32.totalorder %s5271_s21, %s4771_s1  ;;  %s5274_s3 = int_to_ptr.vmem [resolvable:$true] %s468_s3 }
  0xc7   : > { %s4776_s9 = scalar_lea.hbm %s5865_s2, 1024  ;;  %p4777_p9 = scmp.lt.u32.totalorder %s5271_s21, %s5865_s2 }
  0xc8   : > { %p4774_p7 = pnand %p4772_p13, %p5934_p8  ;;  %p4778_p12 = scmp.lt.u32.totalorder %s4776_s9, %s4771_s1 }
  0xc9   : > { %p4780_p6 = scmp.lt.u32.totalorder %s4771_s1, %s5271_s21 }
  0xca   : > { %p4775_p10 = pneg %p4774_p7  ;;  %p4779_p1 = por %p4778_p12, %p4777_p9 }
  0xcc   : > { %p4781_p3 = por %p4780_p6, %p4779_p1 }
  0xce   : > { %p4782_p5 = pnand %p4781_p3, %p4775_p10 }
  0xd0   : > { %4785 = shalt.err (!%p4782_p5)
}
  0xd1   : > { %s4786_s16 = scalar_lea.vmem %s5274_s3, 512  ;;  %s4921_s20 = smov [#allocation8]  }
  0xd2   : > { %p4787_p2 = scmp.ne.s32.totalorder %s5274_s3, %s4786_s16  ;;  %s4791_s6 = sshll.u32 %s4921_s20, 4  ;;  %s4792_s6 = int_to_ptr.vmem [resolvable:$false] %s4791_s6 }
  0xd3   : > { %s4793_s30 = scalar_lea.vmem %s4792_s6, 1024  ;;  %p4794_p13 = scmp.lt.s32.totalorder %s5274_s3, %s4792_s6 }
  0xd4   : > { %p4789_p4 = pnand %p4787_p2, %p5934_p8  ;;  %p4795_p7 = scmp.lt.s32.totalorder %s4793_s30, %s4786_s16 }
  0xd6   : > { %p4790_p11 = pneg %p4789_p4  ;;  %p4796_p9 = por %p4795_p7, %p4794_p13 }
  0xd8   : > { %p4797_p12 = pnand %p4796_p9, %p4790_p11 }
  0xda   : > { %4800 = shalt.err (!%p4797_p12)
}
  0xdb   : > { %4470 = dma.hbm_to_vmem [thread:$0]  (!%p5935_p0), %s5271_s21, 512, %s5274_s3, %s5156_s5, %s5930_s26, %s5930_s26, %s5929_s12  }
  0xdc   : > { %p5936_p8 = scmp.ne.s32.totalorder %s5916_s29, 0 }
  0xdd   : > { %s5304_s11 = sand.u32 (!%p5936_p8), 1, %s4903_s22   ;;  %p5937_p10 = scmp.ne.s32.totalorder (!%p5936_p8), %s5913_s27, 0 }
  0xde   : > { %480 = sbr.rel (%p5936_p8) target bundleno = 3385 (0xd39), region = 64  ;;  %s5307_s19 = sshll.u32 (!%p5936_p8), %s5304_s11, 5 }
  0xdf   : > { %s483_s13 = scalar_lea.sflag (!%p5936_p8), [#allocation4], %s5304_s11  ;;  %s5311_s14 = scalar_lea.vmem (!%p5936_p8), [#allocation3], %s5307_s19 }
  0xe5   : > { %4874 = dma.done.wait (%p5937_p10), %s483_s13, 512  }
  0xe6   : > { %4876 = vsyncadd (%p5937_p10), %s483_s13, 4294966784  ;;  %s491_s5 = sand.u32 1, %s5019_s25   ;;  %s5319_s12 = scalar_lea.vmem [#allocation6], %s5307_s19 }
  0xe7   : > { %s492_s29 = scalar_lea.sflag [#allocation7], %s491_s5 }
  0xe8   : > { %4878 = dma.done.wait (%p5937_p10), %s492_s29, 1024  }
  0xe9   : > { %4880 = vsyncadd (%p5937_p10), %s492_s29, 4294966272  ;;  %s5326_s26 = scalar_lea.vmem [#allocation8], %s5307_s19  ;;  %p5938_p0 = scmp.eq.s32.totalorder %s5019_s25, 0 }
  0xeb   : > { %4882 = dma.done.wait (%p5938_p0), [#allocation10], 1024   ;;  %p5939_p1 = pmov %p5938_p0 }
  0xec   : > { %p5940_p6 = pmov %p5938_p0 }
  0xed   : > { %4884 = vsyncadd (%p5939_p1), [#allocation10], 4294966272 }
  0xee   : > { %4886 = dma.done.wait (%p5940_p6), [#allocation13], 528   ;;  %p5941_p3 = pmov %p5938_p0 }
  0xef   : > { %vm596_vm0 = vcmask 261120   ;;  %v585_v0 = vld [vmem:[#allocation9] sm:$0xff]  ;;  %v586_v1 = vld [vmem:[#allocation9 + $0x8] sm:$0xff]  ;;  %v587_v2 = vld [vmem:[#allocation9 + $0x10] sm:$0xff]  ;;  %v4922_v28 = vmov 0.0   ;;  %vm4923_vm1 = vmmov 0  }
  0xf0   : > { %4888 = vsyncadd (%p5941_p3), [#allocation13], 4294966768  ;;  %v4390_v3 = vpack.c.bf16 %v586_v1, %v585_v0  ;;  %v588_v4 = vld [vmem:[#allocation9 + $0x18] sm:$0xff]  ;;  %v581_v5 = vld [vmem:[%s5311_s14] sm:$0xff]  ;;  %vm918_vm2 = vcmask 64512   ;;  %s5942_s3 = sld [smem:[#allocation33_spill]] }
  0xf1   : > { %v4394_v6 = vpack.c.bf16 %v588_v4, %v587_v2  ;;  %4182 = vmatprep.mubr.msk.f32.mxu1 %vm596_vm0, %v581_v5  ;;  %v698_v7 = vld [vmem:[#allocation11] sm:$0xff]  ;;  %v699_v8 = vld [vmem:[#allocation11 + $0x8] sm:$0xff]  ;;  %v700_v10 = vld [vmem:[#allocation11 + $0x10] sm:$0xff]  ;;  %s4924_s1 = smov 120   ;;  %s4925_s18 = smov 112   ;;  %vm2247_vm3 = vcmask 130112  }
  0xf2   : > { %4391 = vmatprep.subr.bf16.mxu1 %v4390_v3  ;;  %v4398_v9 = vpack.c.bf16 %v699_v8, %v698_v7  ;;  %v701_v11 = vld [vmem:[#allocation11 + $0x18] sm:$0xff]  ;;  %v582_v12 = vld [vmem:[%s5311_s14 + $0x8] sm:$0xff]  ;;  %v583_v13 = vld [vmem:[%s5311_s14 + $0x10] sm:$0xff]  ;;  %s4926_s28 = smov 104   ;;  %s4927_s9 = smov 8   ;;  %vm2932_vm4 = vcmask 195712  }
  0xf3   : > { %4393 = vmatpush3.bf16.msra.mxu1 %v4390_v3  ;;  %v4402_v14 = vpack.c.bf16 %v701_v11, %v700_v10  ;;  %v584_v15 = vld [vmem:[%s5311_s14 + $0x18] sm:$0xff]  ;;  %v694_v16 = vld [vmem:[%s5319_s12] sm:$0xff]  ;;  %v695_v17 = vld [vmem:[%s5319_s12 + $0x8] sm:$0xff]  ;;  %s4928_s15 = smov 16   ;;  %s5708_s17 = scalar_lea.vmem [#allocation16], %s5307_s19  ;;  %vm3617_vm5 = vcmask 261312  }
  0xf4   : > { %4395 = vmatprep.subr.bf16.mxu1 %v4394_v6  ;;  %v696_v18 = vld [vmem:[%s5319_s12 + $0x10] sm:$0xff]  ;;  %v697_v19 = vld [vmem:[%s5319_s12 + $0x18] sm:$0xff]  ;;  %v810_v20 = vld [vmem:[#allocation12] sm:$0xff]  ;;  %s4929_s16 = smov 24   ;;  %s5943_s30 = sld [smem:[#allocation34_spill]] }
  0xf5   : > { %v811_v21 = vld [vmem:[#allocation12 + $0x8] sm:$0xff]  ;;  %v812_v23 = vld [vmem:[#allocation12 + $0x10] sm:$0xff]  ;;  %v813_v24 = vld [vmem:[#allocation12 + $0x18] sm:$0xff]  ;;  %s5944_s27 = sld [smem:[#allocation28_spill]]  ;;  %s4076_s10 = sshll.u32 %s5019_s25, 9 }
  0xf6   : > { %v4406_v22 = vpack.c.bf16 %v811_v21, %v810_v20  ;;  %v4410_v25 = vpack.c.bf16 %v813_v24, %v812_v23  ;;  %v806_v26 = vld [vmem:[%s5326_s26] sm:$0xff]  ;;  %v807_v27 = vld [vmem:[%s5326_s26 + $0x8] sm:$0xff]  ;;  %v808_v29 = vld [vmem:[%s5326_s26 + $0x10] sm:$0xff] }
  0xf7   : > { %4397 = vmatpush3.bf16.msra.mxu1 %v4394_v6  ;;  %4210 = vmatprep.mubr.msk.f32.mxu0 %vm596_vm0, %v806_v26  ;;  %v809_v30 = vld [vmem:[%s5326_s26 + $0x18] sm:$0xff]  ;;  %v4002_v35 = vld [vmem:[%s5870_s7] ss:$0 sm:$0xff] }
  0xf8   : > { %4399 = vmatprep.subr.bf16.mxu1 %v4398_v9  ;;  %4407 = vmatprep.subr.bf16.mxu0 %v4406_v22  ;;  %v3997_v38 = vld [vmem:[%s5942_s3] ss:$0 sm:$0xff]  ;;  %s5945_s3 = sld [smem:[#allocation37_spill]] }
  0xf9   : > { %4409 = vmatpush3.bf16.msra.mxu0 %v4406_v22  ;;  %v4007_v49 = vld [vmem:[#allocation14] ss:$0 sm:$0xff] }
  0xfa   : > { %4183 = vmatmul.mubr.msk.f32.vlgmr.msra.gmra.mrb[0].mxu1 %vm596_vm0, %v582_v12  ;;  %4411 = vmatprep.subr.bf16.mxu0 %v4410_v25 }
  0xfb   : > { %4401 = vmatpush3.bf16.msra.mxu1 %v4398_v9  ;;  %4185 = vmatprep.mubr.msk.f32.mxu1 %vm596_vm0, %v583_v13  ;;  %p5946_p2 = scmp.ne.s32.totalorder %s5944_s27, 0 }
  0xfc   : > { %4403 = vmatprep.subr.bf16.mxu1 %v4402_v14 }
  0xfd   : > { %4413 = vmatpush3.bf16.msra.mxu0 %v4410_v25 }
  0xfe   : > { %4186 = vmatmul.mubr.msk.f32.gmra.mrb[2].mxu1 %vm596_vm0, %v584_v15  ;;  %4226 = vmatprep.subr.mxu0 %v4922_v28 }
  0xff   : > { %4405 = vmatpush3.bf16.msra.mxu1 %v4402_v14  ;;  %4196 = vmatprep.mubr.msk.f32.mxu1 %vm596_vm0, %v694_v16 }
 0x100   : > { %4211 = vmatmul.mubr.msk.f32.vlgmr.msra.gmra.mrb[0].mxu0 %vm596_vm0, %v807_v27  ;;  %4216 = vmatprep.subr.mxu1 %v4922_v28 }
 0x101   : > { %4213 = vmatprep.mubr.msk.f32.mxu0 %vm596_vm0, %v808_v29 }
 0x102   : > { %4197 = vmatmul.mubr.msk.f32.vlgmr.msra.gmra.mrb[4].mxu1 %vm596_vm0, %v695_v17 }
 0x103   : > { %4199 = vmatprep.mubr.msk.f32.mxu1 %vm596_vm0, %v696_v18 }
 0x104   : > { %4214 = vmatmul.mubr.msk.f32.gmra.mrb[2].mxu0 %vm596_vm0, %v809_v30 }
 0x105   : > { %4228 = vmatprep.mubr.msk.f32.mxu0 %vm4923_vm1, %v4922_v28 }
 0x106   : > { %4200 = vmatmul.mubr.msk.f32.gmra.mrb[6].mxu1 %vm596_vm0, %v697_v19 }
 0x107   : > { %4218 = vmatprep.mubr.msk.f32.mxu1 %vm4923_vm1, %v4922_v28 }
 0x1cd   : > { %v4184_v31 = vpop.f32.mrb[0].mxu1 }
 0x1ce   : > { %v675_v32 = vpop.f32.mrb[1].mxu1  ;;  %v5391_v46 = vadd.f32 %v4184_v31, %v3997_v38 }
 0x1cf   : > { %v5376_v41 = vadd.f32 %v3997_v38, %v675_v32 }
 0x1d1   : > { %v4187_v33 = vpop.f32.mrb[2].mxu1 }
 0x1d2   : > { %v685_v34 = vpop.f32.mrb[3].mxu1  ;;  %v5407_v48 = vadd.f32 %v4187_v33, %v3997_v38 }
 0x1d3   : > { %v5393_v47 = vadd.f32 %v3997_v38, %v685_v34  ;;  %v4212_v50 = vpop.f32.mrb[0].mxu0 }
 0x1d4   : > { %v5416_v51 = vadd.f32 %v4212_v50, %v4007_v49  ;;  %v899_v52 = vpop.f32.mrb[1].mxu0 }
 0x1d5   : > { %v4198_v36 = vpop.f32.mrb[4].mxu1  ;;  %v5420_v53 = vadd.f32 %v4007_v49, %v899_v52 }
 0x1d6   : > { %v787_v37 = vpop.f32.mrb[5].mxu1  ;;  %v5379_v43 = vadd.f32 %v4198_v36, %v4002_v35 }
 0x1d7   : > { %v5372_v39 = vadd.f32 %v4002_v35, %v787_v37  ;;  %v4215_v54 = vpop.f32.mrb[2].mxu0 }
 0x1d8   : > { %v5422_v55 = vadd.f32 %v4215_v54, %v4007_v49  ;;  %v909_v56 = vpop.f32.mrb[3].mxu0 }
 0x1d9   : > { %v4201_v40 = vpop.f32.mrb[6].mxu1  ;;  %4217 = vmatpush3.xpose.msk.msra.mxu1 %vm918_vm2, %v5372_v39  ;;  %v5424_v57 = vadd.f32 %v4007_v49, %v909_v56 }
 0x1da   : > { %v797_v42 = vpop.f32.mrb[7].mxu1  ;;  %4221 = vmatprep.subr.mxu1 %v4922_v28  ;;  %v5385_v45 = vadd.f32 %v4201_v40, %v4002_v35 }
 0x1db   : > { %v5381_v44 = vadd.f32 %v4002_v35, %v797_v42 }
 0x1dc   : > { %4219 = vmatmul.mubr.msk.f32.vlgmr.msra.gmra.mrb[8].mxu1 %vm918_vm2, %v5376_v41 }
 0x1dd   : > { %4222 = vmatpush3.xpose.msk.msra.mxu1 %vm918_vm2, %v5379_v43  ;;  %4227 = vmatpush3.xpose.msk.msra.mxu0 %vm918_vm2, %v5381_v44 }
 0x1de   : > { %4223 = vmatprep.mubr.msk.f32.mxu1 %vm4923_vm1, %v4922_v28  ;;  %4231 = vmatprep.subr.mxu1 %v4922_v28 }
 0x1df   : > { %4236 = vmatprep.subr.mxu0 %v4922_v28 }
 0x1e0   : > { %4224 = vmatmul.mubr.msk.f32.vlgmr.msra.gmra.mrb[10].mxu1 %vm918_vm2, %v5391_v46  ;;  %4229 = vmatmul.mubr.msk.f32.vlgmr.msra.gmra.mrb[4].mxu0 %vm918_vm2, %v5393_v47 }
 0x1e1   : > { %4232 = vmatpush3.xpose.msk.msra.mxu1 %vm918_vm2, %v5385_v45  ;;  %4233 = vmatprep.mubr.msk.f32.mxu1 %vm4923_vm1, %v4922_v28 }
 0x1e2   : > { %4241 = vmatprep.subr.mxu1 %v4922_v28  ;;  %4238 = vmatprep.mubr.msk.f32.mxu0 %vm4923_vm1, %v4922_v28 }
 0x1e3   : > { %4237 = vmatpush3.msra.mxu0 %v5420_v53 }
 0x1e4   : > { %4234 = vmatmul.mubr.msk.f32.vlgmr.msra.gmra.mrb[12].mxu1 %vm918_vm2, %v5407_v48  ;;  %4246 = vmatprep.subr.mxu0 %v4922_v28 }
 0x1e5   : > { %4243 = vmatprep.mubr.msk.f32.mxu1 %vm4923_vm1, %v4922_v28  ;;  %4242 = vmatpush3.msra.mxu1 %v5416_v51 }
 0x1e6   : > { %4251 = vmatprep.subr.mxu1 %v4922_v28 }
 0x2af   : > { %v991_v58 = vpop.f32.mrb[8].mxu1 }
 0x2b0   : > { %v4220_v59 = vpop.f32.mrb[9].mxu1  ;;  %v1223_v60 = vsel %vm918_vm2, %v991_v58, -inf }
 0x2b1   : > { %1224 = vmax.xlane.f32.xlu0 %v1223_v60 }
 0x2b3   : > { %v1067_v61 = vpop.f32.mrb[10].mxu1  ;;  %v1143_v62 = vpop.f32.mrb[4].mxu0 }
 0x2b4   : > { %v4225_v63 = vpop.f32.mrb[11].mxu1  ;;  %v4230_v0 = vpop.f32.mrb[5].mxu0  ;;  %v1229_v1 = vsel %vm918_vm2, %v1143_v62, -inf  ;;  %v1226_v2 = vsel %vm918_vm2, %v1067_v61, -inf }
 0x2b5   : > { %1230 = vmax.xlane.f32.xlu1 %v1229_v1  ;;  %1227 = vmax.xlane.f32.xlu0 %v1226_v2 }
 0x2b7   : > { %v1219_v3 = vpop.f32.mrb[12].mxu1 }
 0x2b8   : > { %v4235_v4 = vpop.f32.mrb[13].mxu1  ;;  %v1232_v5 = vsel %vm918_vm2, %v1219_v3, -inf }
 0x2b9   : > { %1233 = vmax.xlane.f32.xlu1 %v1232_v5 }
 0x33e   : > { %v1225_v6 = vpop.xlane.xlu0 %1224 }
 0x33f   : > { %v1235_v7 = vsub.f32 %v991_v58, %v1225_v6 }
 0x341   : > { %v1239_v8 = vmul.f32 1.442695, %v1235_v7 }
 0x342   : > { %v1231_v9 = vpop.xlane.xlu1 %1230  ;;  %v1228_v10 = vpop.xlane.xlu0 %1227 }
 0x343   : > { %4535 = vpow2.f32 %v1239_v8  ;;  %v1237_v11 = vsub.f32 %v1143_v62, %v1231_v9  ;;  %v1236_v12 = vsub.f32 %v1067_v61, %v1228_v10 }
 0x345   : > { %v1243_v13 = vmul.f32 1.442695, %v1237_v11  ;;  %v1241_v14 = vmul.f32 1.442695, %v1236_v12 }
 0x346   : > { %v1234_v21 = vpop.xlane.xlu1 %1233 }
 0x347   : > { %4537 = vpow2.f32 %v1243_v13  ;;  %v1238_v22 = vsub.f32 %v1219_v3, %v1234_v21 }
 0x348   : > { %4539 = vpow2.f32 %v1241_v14 }
 0x349   : > { %v1245_v23 = vmul.f32 1.442695, %v1238_v22 }
 0x34b   : > { %4541 = vpow2.f32 %v1245_v23 }
 0x34d   : > { %v4536_v15 = vpop.eup %4535 }
 0x34e   : > { %v1247_v16 = vsel %vm918_vm2, %v4536_v15, 0.0 }
 0x34f   : > { %1248 = vadd.xlane.f32.xlu0 %v1247_v16 }
 0x351   : > { %v4538_v17 = vpop.eup %4537 }
 0x352   : > { %v4540_v18 = vpop.eup %4539  ;;  %v1253_v19 = vsel %vm918_vm2, %v4538_v17, 0.0 }
 0x353   : > { %1254 = vadd.xlane.f32.xlu0 %v1253_v19  ;;  %v1250_v20 = vsel %vm918_vm2, %v4540_v18, 0.0 }
 0x354   : > { %1251 = vadd.xlane.f32.xlu1 %v1250_v20 }
 0x355   : > { %v4542_v24 = vpop.eup %4541 }
 0x356   : > { %v1256_v25 = vsel %vm918_vm2, %v4542_v24, 0.0 }
 0x365   : > { %1647 = vrot.lane.b32.xlu1 %v5379_v43, %s4924_s1 }
 0x369   : > { %1567 = vrot.lane.b32.xlu1 %v5376_v41, %s4924_s1  ;;  %1569 = vrot.lane.b32.xlu0 %v5372_v39, %s4924_s1 }
 0x36d   : > { %1645 = vrot.lane.b32.xlu1 %v5391_v46, %s4924_s1  ;;  %1725 = vrot.lane.b32.xlu0 %v5381_v44, %s4924_s1 }
 0x371   : > { %1723 = vrot.lane.b32.xlu0 %v5393_v47, %s4924_s1 }
 0x391   : > { %1257 = vadd.xlane.f32.xlu1 %v1256_v25 }
 0x3a2   : > { %1803 = vrot.lane.b32.xlu1 %v5385_v45, %s4924_s1 }
 0x3a6   : > { %1801 = vrot.lane.b32.xlu1 %v5407_v48, %s4924_s1 }
 0x3dc   : > { %v1249_v26 = vpop.xlane.xlu0 %1248 }
 0x3dd   : > { %4543 = vrcp.f32 %v1249_v26 }
 0x3e0   : > { %v1255_v27 = vpop.xlane.xlu0 %1254 }
 0x3e1   : > { %4545 = vrcp.f32 %v1255_v27  ;;  %v1252_v29 = vpop.xlane.xlu1 %1251 }
 0x3e2   : > { %4547 = vrcp.f32 %v1252_v29 }
 0x3e4   : > { %v1570_v35 = vpop.permute.xlu0 %1569 }
 0x3e5   : > { %v1648_v37 = vpop.permute.xlu1 %1647 }
 0x3e7   : > { %v4544_v30 = vpop.eup %4543 }
 0x3e8   : > { %v5452_v31 = vmul.f32 %v4544_v30, %v4536_v15  ;;  %v1726_v38 = vpop.permute.xlu0 %1725 }
 0x3e9   : > { %v1568_v40 = vpop.permute.xlu1 %1567 }
 0x3ea   : > { %4239 = vmatmul.mubr.msk.f32.vlgmr.msra.gmra.mrb[6].mxu0 %vm918_vm2, %v5452_v31 }
 0x3eb   : > { %v4546_v32 = vpop.eup %4545  ;;  %4247 = vmatpush3.msra.mxu0 %v5424_v57  ;;  %4248 = vmatprep.mubr.msk.f32.mxu0 %vm4923_vm1, %v4922_v28 }
 0x3ec   : > { %v4548_v33 = vpop.eup %4547  ;;  %v5459_v34 = vmul.f32 %v4546_v32, %v4538_v17  ;;  %4256 = vmatprep.subr.mxu0 %v4922_v28  ;;  %v1724_v42 = vpop.permute.xlu0 %1723 }
 0x3ed   : > { %v5462_v36 = vmul.f32 %v4548_v33, %v4540_v18  ;;  %v1646_v49 = vpop.permute.xlu1 %1645 }
 0x3ee   : > { %4249 = vmatmul.mubr.msk.f32.vlgmr.msra.gmra.mrb[8].mxu0 %vm918_vm2, %v5459_v34 }
 0x3ef   : > { %4244 = vmatmul.mubr.msk.f32.vlgmr.msra.gmra.mrb[14].mxu1 %vm918_vm2, %v5462_v36  ;;  %4258 = vmatprep.mubr.msk.f32.mxu0 %vm4923_vm1, %v4922_v28 }
 0x3f0   : > { %4252 = vmatpush3.msra.mxu1 %v5422_v55  ;;  %4253 = vmatprep.mubr.msk.f32.mxu1 %vm4923_vm1, %v4922_v28 }
 0x3f1   : > { %4261 = vmatprep.subr.mxu1 %v4922_v28 }
 0x3f2   : > { %4257 = vmatpush3.xpose.msk.msra.mxu0 %vm918_vm2, %v1570_v35 }
 0x3f3   : > { %4266 = vmatprep.subr.mxu0 %v4922_v28 }
 0x3f5   : > { %4259 = vmatmul.mubr.msk.f32.vlgmr.msra.gmra.mrb[10].mxu0 %vm918_vm2, %v1568_v40 }
 0x3f6   : > { %4267 = vmatpush3.xpose.msk.msra.mxu0 %vm918_vm2, %v1726_v38  ;;  %4268 = vmatprep.mubr.msk.f32.mxu0 %vm4923_vm1, %v4922_v28 }
 0x3f7   : > { %4276 = vmatprep.subr.mxu0 %v4922_v28 }
 0x3f9   : > { %4269 = vmatmul.mubr.msk.f32.vlgmr.msra.gmra.mrb[12].mxu0 %vm918_vm2, %v1724_v42 }
 0x3fa   : > { %4278 = vmatprep.mubr.msk.f32.mxu0 %vm4923_vm1, %v4922_v28 }
 0x41e   : > { %v1258_v50 = vpop.xlane.xlu1 %1257 }
 0x41f   : > { %4549 = vrcp.f32 %v1258_v50 }
 0x422   : > { %v1804_v56 = vpop.permute.xlu1 %1803 }
 0x426   : > { %v1802_v58 = vpop.permute.xlu1 %1801 }
 0x429   : > { %v4550_v52 = vpop.eup %4549 }
 0x42a   : > { %v5484_v54 = vmul.f32 %v4550_v52, %v4542_v24 }
 0x42c   : > { %4254 = vmatmul.mubr.msk.f32.vlgmr.msra.gmra.mrb[16].mxu1 %vm918_vm2, %v5484_v54 }
 0x42d   : > { %4262 = vmatpush3.xpose.msk.msra.mxu1 %vm918_vm2, %v1648_v37  ;;  %4263 = vmatprep.mubr.msk.f32.mxu1 %vm4923_vm1, %v4922_v28 }
 0x42e   : > { %4271 = vmatprep.subr.mxu1 %v4922_v28 }
 0x430   : > { %4264 = vmatmul.mubr.msk.f32.vlgmr.msra.gmra.mrb[18].mxu1 %vm918_vm2, %v1646_v49 }
 0x431   : > { %4272 = vmatpush3.xpose.msk.msra.mxu1 %vm918_vm2, %v1804_v56  ;;  %4273 = vmatprep.mubr.msk.f32.mxu1 %vm4923_vm1, %v4922_v28 }
 0x432   : > { %4281 = vmatprep.subr.mxu1 %v4922_v28 }
 0x434   : > { %4274 = vmatmul.mubr.msk.f32.vlgmr.msra.gmra.mrb[20].mxu1 %vm918_vm2, %v1802_v58 }
 0x435   : > { %4283 = vmatprep.mubr.msk.f32.mxu1 %vm4923_vm1, %v4922_v28 }
 0x4bd   : > { %v1336_v59 = vpop.f32.mrb[6].mxu0 }
 0x4be   : > { %1559 = vst.msk [vmem:[#allocation2] sm:$0xff] %vm918_vm2, %v1336_v59  ;;  %v4240_v60 = vpop.f32.mrb[7].mxu0 }
 0x4c1   : > { %v1482_v61 = vpop.f32.mrb[8].mxu0 }
 0x4c2   : > { %v1409_v62 = vpop.f32.mrb[14].mxu1  ;;  %1561 = vst.msk [vmem:[#allocation2 + $0x10] sm:$0xff] %vm918_vm2, %v1482_v61  ;;  %v4250_v63 = vpop.f32.mrb[9].mxu0 }
 0x4c3   : > { %1560 = vst.msk [vmem:[#allocation2 + $0x8] sm:$0xff] %vm918_vm2, %v1409_v62  ;;  %v4245_v0 = vpop.f32.mrb[15].mxu1 }
 0x4c8   : > { %v1641_v1 = vpop.f32.mrb[10].mxu0 }
 0x4c9   : > { %v4260_v2 = vpop.f32.mrb[11].mxu0  ;;  %v1879_v3 = vsel %vm918_vm2, %v1641_v1, -inf }
 0x4ca   : > { %1880 = vmax.xlane.f32.xlu0 %v1879_v3 }
 0x4cc   : > { %v1797_v4 = vpop.f32.mrb[12].mxu0 }
 0x4cd   : > { %v4270_v5 = vpop.f32.mrb[13].mxu0  ;;  %v1885_v6 = vsel %vm918_vm2, %v1797_v4, -inf }
 0x4ce   : > { %1886 = vmax.xlane.f32.xlu0 %v1885_v6 }
 0x4ff   : > { %v1555_v7 = vpop.f32.mrb[16].mxu1 }
 0x500   : > { %1562 = vst.msk [vmem:[#allocation2 + $0x18] sm:$0xff] %vm918_vm2, %v1555_v7  ;;  %v4255_v8 = vpop.f32.mrb[17].mxu1 }
 0x503   : > { %v1719_v9 = vpop.f32.mrb[18].mxu1 }
 0x504   : > { %v4265_v10 = vpop.f32.mrb[19].mxu1  ;;  %v1882_v11 = vsel %vm918_vm2, %v1719_v9, -inf }
 0x505   : > { %1883 = vmax.xlane.f32.xlu1 %v1882_v11 }
 0x507   : > { %v1875_v12 = vpop.f32.mrb[20].mxu1 }
 0x508   : > { %v4275_v13 = vpop.f32.mrb[21].mxu1  ;;  %v1888_v14 = vsel %vm918_vm2, %v1875_v12, -inf }
 0x509   : > { %1889 = vmax.xlane.f32.xlu0 %v1888_v14 }
 0x516   : > { %2001 = vrot.lane.b32.xlu1 %v5416_v51, %s4924_s1 }
 0x51a   : > { %2078 = vrot.lane.b32.xlu1 %v5424_v57, %s4924_s1 }
 0x51e   : > { %2155 = vrot.lane.b32.xlu1 %v5422_v55, %s4924_s1 }
 0x51f   : > { %1924 = vrot.lane.b32.xlu0 %v5420_v53, %s4924_s1  ;;  %s5769_s1 = scalar_lea.hbm %s5945_s3, %s4076_s10 }
 0x522   : > { %2336 = vrot.lane.b32.xlu1 %v5379_v43, %s4925_s18 }
 0x523   : > { %2258 = vrot.lane.b32.xlu0 %v5372_v39, %s4925_s18 }
 0x557   : > { %v1881_v15 = vpop.xlane.xlu0 %1880 }
 0x558   : > { %v1891_v16 = vsub.f32 %v1641_v1, %v1881_v15 }
 0x55a   : > { %v1895_v17 = vmul.f32 1.442695, %v1891_v16 }
 0x55b   : > { %v1887_v18 = vpop.xlane.xlu0 %1886 }
 0x55c   : > { %4551 = vpow2.f32 %v1895_v17  ;;  %v1893_v19 = vsub.f32 %v1797_v4, %v1887_v18 }
 0x55e   : > { %v1899_v20 = vmul.f32 1.442695, %v1893_v19 }
 0x560   : > { %4553 = vpow2.f32 %v1899_v20 }
 0x566   : > { %v4552_v21 = vpop.eup %4551 }
 0x567   : > { %v1903_v22 = vsel %vm918_vm2, %v4552_v21, 0.0 }
 0x568   : > { %1904 = vadd.xlane.f32.xlu0 %v1903_v22 }
 0x56a   : > { %v4554_v23 = vpop.eup %4553 }
 0x56b   : > { %v1909_v24 = vsel %vm918_vm2, %v4554_v23, 0.0 }
 0x56c   : > { %1910 = vadd.xlane.f32.xlu0 %v1909_v24 }
 0x582   : > { %2256 = vrot.lane.b32.xlu0 %v5376_v41, %s4925_s18 }
 0x586   : > { %2414 = vrot.lane.b32.xlu0 %v5381_v44, %s4925_s18 }
 0x58a   : > { %2412 = vrot.lane.b32.xlu0 %v5393_v47, %s4925_s18 }
 0x58e   : > { %2612 = vrot.lane.b32.xlu0 %v5420_v53, %s4925_s18 }
 0x592   : > { %v1884_v25 = vpop.xlane.xlu1 %1883 }
 0x593   : > { %v1892_v26 = vsub.f32 %v1719_v9, %v1884_v25 }
 0x595   : > { %v1897_v27 = vmul.f32 1.442695, %v1892_v26 }
 0x596   : > { %v2002_v29 = vpop.permute.xlu1 %2001  ;;  %v1890_v30 = vpop.xlane.xlu0 %1889 }
 0x597   : > { %4555 = vpow2.f32 %v1897_v27  ;;  %4282 = vmatpush3.msra.mxu1 %v2002_v29  ;;  %v1894_v37 = vsub.f32 %v1875_v12, %v1890_v30 }
 0x598   : > { %4291 = vmatprep.subr.mxu1 %v4922_v28 }
 0x599   : > { %v1901_v38 = vmul.f32 1.442695, %v1894_v37 }
 0x59a   : > { %v1925_v32 = vpop.permute.xlu0 %1924  ;;  %v2079_v60 = vpop.permute.xlu1 %2078 }
 0x59b   : > { %4277 = vmatpush3.msra.mxu0 %v1925_v32  ;;  %4557 = vpow2.f32 %v1901_v38 }
 0x59c   : > { %4286 = vmatprep.subr.mxu0 %v4922_v28 }
 0x59e   : > { %v2259_v49 = vpop.permute.xlu0 %2258  ;;  %v2156_v2 = vpop.permute.xlu1 %2155 }
 0x5a1   : > { %v4556_v33 = vpop.eup %4555 }
 0x5a2   : > { %v1906_v35 = vsel %vm918_vm2, %v4556_v33, 0.0  ;;  %v2337_v3 = vpop.permute.xlu1 %2336 }
 0x5a3   : > { %1907 = vadd.xlane.f32.xlu1 %v1906_v35 }
 0x5a5   : > { %v4558_v40 = vpop.eup %4557 }
 0x5a6   : > { %v1912_v42 = vsel %vm918_vm2, %v4558_v40, 0.0 }
 0x5b4   : > { %2334 = vrot.lane.b32.xlu1 %v5391_v46, %s4925_s18 }
 0x5d8   : > { %1913 = vadd.xlane.f32.xlu1 %v1912_v42 }
 0x5e9   : > { %2492 = vrot.lane.b32.xlu1 %v5385_v45, %s4925_s18 }
 0x5ed   : > { %2490 = vrot.lane.b32.xlu1 %v5407_v48, %s4925_s18 }
 0x5f1   : > { %2688 = vrot.lane.b32.xlu1 %v5416_v51, %s4925_s18 }
 0x5f5   : > { %2764 = vrot.lane.b32.xlu1 %v5424_v57, %s4925_s18  ;;  %v1905_v50 = vpop.xlane.xlu0 %1904 }
 0x5f6   : > { %4559 = vrcp.f32 %v1905_v50 }
 0x5f9   : > { %2840 = vrot.lane.b32.xlu1 %v5422_v55, %s4925_s18  ;;  %v1911_v52 = vpop.xlane.xlu0 %1910  ;;  %s3785_s18 = sshll.u32 %s5708_s17, 4  ;;  %s5772_s18 = int_to_ptr.vmem [resolvable:$true] %s3785_s18 }
 0x5fa   : > { %4561 = vrcp.f32 %v1911_v52 }
 0x5fd   : > { %v2257_v58 = vpop.permute.xlu0 %2256 }
 0x600   : > { %v4560_v56 = vpop.eup %4559 }
 0x601   : > { %v5546_v59 = vmul.f32 %v4560_v56, %v4552_v21  ;;  %v2415_v63 = vpop.permute.xlu0 %2414 }
 0x603   : > { %4279 = vmatmul.mubr.msk.f32.vlgmr.msra.gmra.mrb[14].mxu0 %vm918_vm2, %v5546_v59 }
 0x604   : > { %v4562_v61 = vpop.eup %4561  ;;  %4287 = vmatpush3.msra.mxu0 %v2079_v60  ;;  %4288 = vmatprep.mubr.msk.f32.mxu0 %vm4923_vm1, %v4922_v28 }
 0x605   : > { %v5552_v62 = vmul.f32 %v4562_v61, %v4554_v23  ;;  %4296 = vmatprep.subr.mxu0 %v4922_v28  ;;  %v2413_v0 = vpop.permute.xlu0 %2412 }
 0x607   : > { %4289 = vmatmul.mubr.msk.f32.vlgmr.msra.gmra.mrb[16].mxu0 %vm918_vm2, %v5552_v62 }
 0x608   : > { %4298 = vmatprep.mubr.msk.f32.mxu0 %vm4923_vm1, %v4922_v28 }
 0x609   : > { %v2613_v1 = vpop.permute.xlu0 %2612 }
 0x60b   : > { %4297 = vmatpush3.xpose.msk.msra.mxu0 %vm918_vm2, %v2259_v49 }
 0x60c   : > { %4306 = vmatprep.subr.mxu0 %v4922_v28 }
 0x60e   : > { %4299 = vmatmul.mubr.msk.f32.vlgmr.msra.gmra.mrb[18].mxu0 %vm918_vm2, %v2257_v58 }
 0x60f   : > { %4307 = vmatpush3.xpose.msk.msra.mxu0 %vm918_vm2, %v2415_v63  ;;  %4308 = vmatprep.mubr.msk.f32.mxu0 %vm4923_vm1, %v4922_v28 }
 0x610   : > { %4316 = vmatprep.subr.mxu0 %v4922_v28 }
 0x612   : > { %4309 = vmatmul.mubr.msk.f32.vlgmr.msra.gmra.mrb[20].mxu0 %vm918_vm2, %v2413_v0 }
 0x613   : > { %4317 = vmatpush3.msra.mxu0 %v2613_v1  ;;  %4318 = vmatprep.mubr.msk.f32.mxu0 %vm4923_vm1, %v4922_v28 }
 0x614   : > { %4326 = vmatprep.subr.mxu0 %v4922_v28 }
 0x630   : > { %v1908_v4 = vpop.xlane.xlu1 %1907 }
 0x631   : > { %4563 = vrcp.f32 %v1908_v4 }
 0x634   : > { %v2335_v7 = vpop.permute.xlu1 %2334 }
 0x63b   : > { %v4564_v5 = vpop.eup %4563 }
 0x63c   : > { %v5570_v6 = vmul.f32 %v4564_v5, %v4556_v33 }
 0x63e   : > { %4284 = vmatmul.mubr.msk.f32.vlgmr.msra.gmra.mrb[22].mxu1 %vm918_vm2, %v5570_v6 }
 0x63f   : > { %4292 = vmatpush3.msra.mxu1 %v2156_v2  ;;  %4293 = vmatprep.mubr.msk.f32.mxu1 %vm4923_vm1, %v4922_v28 }
 0x640   : > { %4301 = vmatprep.subr.mxu1 %v4922_v28 }
 0x665   : > { %v1914_v8 = vpop.xlane.xlu1 %1913 }
 0x666   : > { %4565 = vrcp.f32 %v1914_v8  ;;  %v2252_v8 = vadd.f32 %v5546_v59, %v5452_v31  ;;  %v2254_v59 = vadd.f32 %v5552_v62, %v5459_v34 }
 0x669   : > { %v2493_v9 = vpop.permute.xlu1 %2492 }
 0x66d   : > { %v2491_v12 = vpop.permute.xlu1 %2490 }
 0x670   : > { %v4566_v10 = vpop.eup %4565 }
 0x671   : > { %v5577_v11 = vmul.f32 %v4566_v10, %v4558_v40  ;;  %v2689_v13 = vpop.permute.xlu1 %2688 }
 0x673   : > { %4294 = vmatmul.mubr.msk.f32.vlgmr.msra.gmra.mrb[24].mxu1 %vm918_vm2, %v5577_v11 }
 0x674   : > { %4302 = vmatpush3.xpose.msk.msra.mxu1 %vm918_vm2, %v2337_v3  ;;  %4303 = vmatprep.mubr.msk.f32.mxu1 %vm4923_vm1, %v4922_v28 }
 0x675   : > { %4311 = vmatprep.subr.mxu1 %v4922_v28 }
 0x677   : > { %4304 = vmatmul.mubr.msk.f32.vlgmr.msra.gmra.mrb[26].mxu1 %vm918_vm2, %v2335_v7 }
 0x678   : > { %4312 = vmatpush3.xpose.msk.msra.mxu1 %vm918_vm2, %v2493_v9  ;;  %4313 = vmatprep.mubr.msk.f32.mxu1 %vm4923_vm1, %v4922_v28 }
 0x679   : > { %4321 = vmatprep.subr.mxu1 %v4922_v28 }
 0x67b   : > { %4314 = vmatmul.mubr.msk.f32.vlgmr.msra.gmra.mrb[28].mxu1 %vm918_vm2, %v2491_v12 }
 0x67c   : > { %4322 = vmatpush3.msra.mxu1 %v2689_v13  ;;  %4323 = vmatprep.mubr.msk.f32.mxu1 %vm4923_vm1, %v4922_v28 }
 0x67d   : > { %4331 = vmatprep.subr.mxu1 %v4922_v28 }
 0x6d6   : > { %v5594_v14 = vpop.f32.mrb[14].mxu0 }
 0x6d7   : > { %v4280_v15 = vpop.f32.mrb[15].mxu0 }
 0x6da   : > { %v5596_v16 = vpop.f32.mrb[16].mxu0 }
 0x6db   : > { %v4290_v17 = vpop.f32.mrb[17].mxu0 }
 0x6e1   : > { %v2330_v18 = vpop.f32.mrb[18].mxu0 }
 0x6e2   : > { %v4300_v19 = vpop.f32.mrb[19].mxu0  ;;  %v2568_v20 = vsel %vm918_vm2, %v2330_v18, -inf }
 0x6e3   : > { %2569 = vmax.xlane.f32.xlu0 %v2568_v20 }
 0x6e5   : > { %v2486_v21 = vpop.f32.mrb[20].mxu0 }
 0x6e6   : > { %v4310_v22 = vpop.f32.mrb[21].mxu0  ;;  %v2574_v23 = vsel %vm918_vm2, %v2486_v21, -inf }
 0x6e7   : > { %2575 = vmax.xlane.f32.xlu0 %v2574_v23 }
 0x711   : > { %v5600_v24 = vpop.f32.mrb[22].mxu1 }
 0x712   : > { %v4285_v25 = vpop.f32.mrb[23].mxu1 }
 0x746   : > { %v5602_v26 = vpop.f32.mrb[24].mxu1 }
 0x747   : > { %v4295_v27 = vpop.f32.mrb[25].mxu1 }
 0x74a   : > { %v2408_v29 = vpop.f32.mrb[26].mxu1 }
 0x74b   : > { %v4305_v30 = vpop.f32.mrb[27].mxu1  ;;  %v2571_v32 = vsel %vm918_vm2, %v2408_v29, -inf }
 0x74c   : > { %2572 = vmax.xlane.f32.xlu1 %v2571_v32  ;;  %v2255_v30 = vadd.f32 %v5577_v11, %v5484_v54 }
 0x74e   : > { %v2564_v33 = vpop.f32.mrb[28].mxu1 }
 0x74f   : > { %v4315_v35 = vpop.f32.mrb[29].mxu1  ;;  %v2577_v37 = vsel %vm918_vm2, %v2564_v33, -inf }
 0x750   : > { %2578 = vmax.xlane.f32.xlu0 %v2577_v37 }
 0x75d   : > { %3021 = vrot.lane.b32.xlu1 %v5379_v43, %s4926_s28 }
 0x761   : > { %3019 = vrot.lane.b32.xlu1 %v5391_v46, %s4926_s28 }
 0x766   : > { %2943 = vrot.lane.b32.xlu0 %v5372_v39, %s4926_s28  ;;  %v2765_v39 = vpop.permute.xlu1 %2764 }
 0x76a   : > { %v2841_v60 = vpop.permute.xlu1 %2840 }
 0x770   : > { %v2570_v38 = vpop.xlane.xlu0 %2569 }
 0x771   : > { %v2580_v40 = vsub.f32 %v2330_v18, %v2570_v38 }
 0x773   : > { %v2584_v42 = vmul.f32 1.442695, %v2580_v40 }
 0x774   : > { %v2576_v52 = vpop.xlane.xlu0 %2575 }
 0x775   : > { %4567 = vpow2.f32 %v2584_v42  ;;  %v2582_v56 = vsub.f32 %v2486_v21, %v2576_v52  ;;  %v2253_v21 = vadd.f32 %v5570_v6, %v5462_v36 }
 0x777   : > { %v2588_v43 = vmul.f32 1.442695, %v2582_v56 }
 0x779   : > { %4569 = vpow2.f32 %v2588_v43 }
 0x77f   : > { %v4568_v49 = vpop.eup %4567 }
 0x780   : > { %v2592_v50 = vsel %vm918_vm2, %v4568_v49, 0.0 }
 0x783   : > { %v4570_v58 = vpop.eup %4569 }
 0x784   : > { %v2598_v46 = vsel %vm918_vm2, %v4570_v58, 0.0 }
 0x785   : > { %2593 = vadd.xlane.f32.xlu0 %v2592_v50 }
 0x79b   : > { %2941 = vrot.lane.b32.xlu0 %v5376_v41, %s4926_s28 }
 0x7ba   : > { %2599 = vadd.xlane.f32.xlu0 %v2598_v46 }
 0x7d0   : > { %3099 = vrot.lane.b32.xlu0 %v5381_v44, %s4926_s28 }
 0x7d4   : > { %3097 = vrot.lane.b32.xlu0 %v5393_v47, %s4926_s28 }
 0x7d9   : > { %v2573_v61 = vpop.xlane.xlu1 %2572 }
 0x7da   : > { %v2581_v63 = vsub.f32 %v2408_v29, %v2573_v61 }
 0x7dc   : > { %v2586_v0 = vmul.f32 1.442695, %v2581_v63 }
 0x7dd   : > { %v2579_v2 = vpop.xlane.xlu0 %2578  ;;  %v3022_v34 = vpop.permute.xlu1 %3021 }
 0x7de   : > { %4571 = vpow2.f32 %v2586_v0  ;;  %v2583_v3 = vsub.f32 %v2564_v33, %v2579_v2 }
 0x7e0   : > { %v2590_v4 = vmul.f32 1.442695, %v2583_v3 }
 0x7e1   : > { %v2944_v5 = vpop.permute.xlu0 %2943  ;;  %v3020_v62 = vpop.permute.xlu1 %3019 }
 0x7e2   : > { %4573 = vpow2.f32 %v2590_v4 }
 0x7e8   : > { %v4572_v41 = vpop.eup %4571 }
 0x7e9   : > { %v2595_v1 = vsel %vm918_vm2, %v4572_v41, 0.0 }
 0x7ea   : > { %2596 = vadd.xlane.f32.xlu1 %v2595_v1 }
 0x7ec   : > { %v4574_v47 = vpop.eup %4573 }
 0x7ed   : > { %v2601_v10 = vsel %vm918_vm2, %v4574_v47, 0.0 }
 0x7fb   : > { %3177 = vrot.lane.b32.xlu1 %v5385_v45, %s4926_s28 }
 0x812   : > { %v2594_v44 = vpop.xlane.xlu0 %2593 }
 0x813   : > { %4575 = vrcp.f32 %v2594_v44 }
 0x816   : > { %v2942_v45 = vpop.permute.xlu0 %2941 }
 0x81d   : > { %v4576_v7 = vpop.eup %4575 }
 0x81e   : > { %v2608_v9 = vmul.f32 %v4576_v7, %v4568_v49 }
 0x81f   : > { %2602 = vadd.xlane.f32.xlu1 %v2601_v10 }
 0x820   : > { %v5626_v12 = vadd.f32 %v2608_v9, %v2252_v8  ;;  %4319 = vmatmul.mubr.msk.f32.vlgmr.msra.gmra.mrb[22].mxu0 %vm918_vm2, %v2608_v9 }
 0x821   : > { %4327 = vmatpush3.msra.mxu0 %v2765_v39  ;;  %4328 = vmatprep.mubr.msk.f32.mxu0 %vm4923_vm1, %v4922_v28 }
 0x822   : > { %4336 = vmatprep.subr.mxu0 %v4922_v28 }
 0x830   : > { %3175 = vrot.lane.b32.xlu1 %v5407_v48, %s4926_s28 }
 0x847   : > { %v2600_v13 = vpop.xlane.xlu0 %2599 }
 0x848   : > { %4577 = vrcp.f32 %v2600_v13 }
 0x84b   : > { %v3100_v18 = vpop.permute.xlu0 %3099 }
 0x84f   : > { %v3098_v48 = vpop.permute.xlu0 %3097 }
 0x852   : > { %v4578_v31 = vpop.eup %4577 }
 0x853   : > { %v2610_v15 = vmul.f32 %v4578_v31, %v4570_v58 }
 0x855   : > { %v5636_v17 = vadd.f32 %v2610_v15, %v2254_v59  ;;  %4329 = vmatmul.mubr.msk.f32.vlgmr.msra.gmra.mrb[24].mxu0 %vm918_vm2, %v2610_v15 }
 0x856   : > { %4337 = vmatpush3.xpose.msk.msra.mxu0 %vm918_vm2, %v2944_v5  ;;  %4338 = vmatprep.mubr.msk.f32.mxu0 %vm4923_vm1, %v4922_v28 }
 0x857   : > { %4346 = vmatprep.subr.mxu0 %v4922_v28 }
 0x859   : > { %4339 = vmatmul.mubr.msk.f32.vlgmr.msra.gmra.mrb[26].mxu0 %vm918_vm2, %v2942_v45 }
 0x85a   : > { %4347 = vmatpush3.xpose.msk.msra.mxu0 %vm918_vm2, %v3100_v18  ;;  %4348 = vmatprep.mubr.msk.f32.mxu0 %vm4923_vm1, %v4922_v28 }
 0x85b   : > { %4356 = vmatprep.subr.mxu0 %v4922_v28 }
 0x85d   : > { %4349 = vmatmul.mubr.msk.f32.vlgmr.msra.gmra.mrb[28].mxu0 %vm918_vm2, %v3098_v48 }
 0x85e   : > { %4358 = vmatprep.mubr.msk.f32.mxu0 %vm4923_vm1, %v4922_v28 }
 0x877   : > { %v2597_v19 = vpop.xlane.xlu1 %2596 }
 0x878   : > { %4579 = vrcp.f32 %v2597_v19 }
 0x87b   : > { %v3178_v25 = vpop.permute.xlu1 %3177 }
 0x882   : > { %v4580_v20 = vpop.eup %4579 }
 0x883   : > { %v2609_v22 = vmul.f32 %v4580_v20, %v4572_v41 }
 0x885   : > { %v5653_v23 = vadd.f32 %v2609_v22, %v2253_v21  ;;  %4324 = vmatmul.mubr.msk.f32.vlgmr.msra.gmra.mrb[30].mxu1 %vm918_vm2, %v2609_v22 }
 0x886   : > { %4332 = vmatpush3.msra.mxu1 %v2841_v60  ;;  %4333 = vmatprep.mubr.msk.f32.mxu1 %vm4923_vm1, %v4922_v28 }
 0x887   : > { %4341 = vmatprep.subr.mxu1 %v4922_v28 }
 0x8ac   : > { %v2603_v27 = vpop.xlane.xlu1 %2602 }
 0x8ad   : > { %4581 = vrcp.f32 %v2603_v27 }
 0x8b0   : > { %v3176_v54 = vpop.permute.xlu1 %3175 }
 0x8b7   : > { %v4582_v29 = vpop.eup %4581 }
 0x8b8   : > { %v2611_v32 = vmul.f32 %v4582_v29, %v4574_v47 }
 0x8ba   : > { %v5661_v36 = vadd.f32 %v2611_v32, %v2255_v30  ;;  %4334 = vmatmul.mubr.msk.f32.vlgmr.msra.gmra.mrb[32].mxu1 %vm918_vm2, %v2611_v32 }
 0x8bb   : > { %4342 = vmatpush3.xpose.msk.msra.mxu1 %vm918_vm2, %v3022_v34  ;;  %4343 = vmatprep.mubr.msk.f32.mxu1 %vm4923_vm1, %v4922_v28 }
 0x8bc   : > { %4351 = vmatprep.subr.mxu1 %v4922_v28 }
 0x8be   : > { %4344 = vmatmul.mubr.msk.f32.vlgmr.msra.gmra.mrb[34].mxu1 %vm918_vm2, %v3020_v62 }
 0x8bf   : > { %4352 = vmatpush3.xpose.msk.msra.mxu1 %vm918_vm2, %v3178_v25  ;;  %4353 = vmatprep.mubr.msk.f32.mxu1 %vm4923_vm1, %v4922_v28 }
 0x8c0   : > { %4361 = vmatprep.subr.mxu1 %v4922_v28 }
 0x8c2   : > { %4354 = vmatmul.mubr.msk.f32.vlgmr.msra.gmra.mrb[36].mxu1 %vm918_vm2, %v3176_v54 }
 0x8c3   : > { %4363 = vmatprep.mubr.msk.f32.mxu1 %vm4923_vm1, %v4922_v28 }
 0x8f3   : > { %v2684_v6 = vpop.f32.mrb[22].mxu0 }
 0x8f4   : > { %v4320_v11 = vpop.f32.mrb[23].mxu0 }
 0x928   : > { %v2836_v33 = vpop.f32.mrb[24].mxu0 }
 0x929   : > { %v4330_v35 = vpop.f32.mrb[25].mxu0 }
 0x92c   : > { %v3015_v37 = vpop.f32.mrb[26].mxu0 }
 0x92d   : > { %v4340_v38 = vpop.f32.mrb[27].mxu0  ;;  %v3253_v40 = vsel %vm918_vm2, %v3015_v37, -inf }
 0x92e   : > { %3254 = vmax.xlane.f32.xlu0 %v3253_v40 }
 0x930   : > { %v3171_v42 = vpop.f32.mrb[28].mxu0 }
 0x931   : > { %v4350_v49 = vpop.f32.mrb[29].mxu0  ;;  %v3259_v50 = vsel %vm918_vm2, %v3171_v42, -inf }
 0x932   : > { %3260 = vmax.xlane.f32.xlu0 %v3259_v50 }
 0x958   : > { %v5678_v52 = vpop.f32.mrb[30].mxu1 }
 0x959   : > { %v4325_v56 = vpop.f32.mrb[31].mxu1 }
 0x95a   : > { %v3630_v56 = vld [vmem:[%s5943_s30] sm:$0xff] }
 0x98d   : > { %v5680_v43 = vpop.f32.mrb[32].mxu1 }
 0x98e   : > { %v4335_v58 = vpop.f32.mrb[33].mxu1 }
 0x98f   : > { %v3632_v58 = vld [vmem:[%s5943_s30 + $0x10] sm:$0xff] }
 0x991   : > { %v3093_v46 = vpop.f32.mrb[34].mxu1 }
 0x992   : > { %v4345_v39 = vpop.f32.mrb[35].mxu1  ;;  %v3256_v60 = vsel %vm918_vm2, %v3093_v46, -inf }
 0x993   : > { %3257 = vmax.xlane.f32.xlu1 %v3256_v60 }
 0x995   : > { %v3249_v61 = vpop.f32.mrb[36].mxu1 }
 0x996   : > { %v4355_v63 = vpop.f32.mrb[37].mxu1  ;;  %v3262_v0 = vsel %vm918_vm2, %v3249_v61, -inf }
 0x997   : > { %3263 = vmax.xlane.f32.xlu0 %v3262_v0 }
 0x9bb   : > { %v3255_v41 = vpop.xlane.xlu0 %3254 }
 0x9bc   : > { %v3265_v1 = vsub.f32 %v3015_v37, %v3255_v41 }
 0x9be   : > { %v3269_v2 = vmul.f32 1.442695, %v3265_v1 }
 0x9bf   : > { %v3261_v3 = vpop.xlane.xlu0 %3260 }
 0x9c0   : > { %4583 = vpow2.f32 %v3269_v2  ;;  %v3267_v4 = vsub.f32 %v3171_v42, %v3261_v3 }
 0x9c2   : > { %v3273_v5 = vmul.f32 1.442695, %v3267_v4 }
 0x9c4   : > { %4585 = vpow2.f32 %v3273_v5 }
 0x9ca   : > { %v4584_v44 = vpop.eup %4583 }
 0x9cb   : > { %v3277_v47 = vsel %vm918_vm2, %v4584_v44, 0.0 }
 0x9cc   : > { %3278 = vadd.xlane.f32.xlu0 %v3277_v47 }
 0x9ce   : > { %v4586_v7 = vpop.eup %4585 }
 0x9cf   : > { %v3283_v8 = vsel %vm918_vm2, %v4586_v7, 0.0 }
 0x9d0   : > { %3284 = vadd.xlane.f32.xlu0 %v3283_v8 }
 0x9e6   : > { %3297 = vrot.lane.b32.xlu0 %v5420_v53, %s4926_s28 }
 0x9ea   : > { %2235 = vrot.lane.b32.xlu0 %v5594_v14, %s4927_s9 }
 0x9ee   : > { %2920 = vrot.lane.b32.xlu0 %v2684_v6, %s4928_s15 }
 0x9f2   : > { %2239 = vrot.lane.b32.xlu0 %v5596_v16, %s4927_s9 }
 0x9f6   : > { %2924 = vrot.lane.b32.xlu0 %v2836_v33, %s4928_s15 }
 0xa20   : > { %v3258_v9 = vpop.xlane.xlu1 %3257 }
 0xa21   : > { %v3266_v10 = vsub.f32 %v3093_v46, %v3258_v9  ;;  %v3633_v46 = vld [vmem:[%s5943_s30 + $0x18] sm:$0xff] }
 0xa22   : > { %v4418_v39 = vpack.c.bf16 %v3633_v46, %v3632_v58 }
 0xa23   : > { %v3271_v45 = vmul.f32 1.442695, %v3266_v10 }
 0xa24   : > { %v3264_v53 = vpop.xlane.xlu0 %3263 }
 0xa25   : > { %4587 = vpow2.f32 %v3271_v45  ;;  %v3268_v14 = vsub.f32 %v3249_v61, %v3264_v53 }
 0xa27   : > { %v3275_v59 = vmul.f32 1.442695, %v3268_v14 }
 0xa2f   : > { %v4588_v13 = vpop.eup %4587 }
 0xa30   : > { %v3280_v31 = vsel %vm918_vm2, %v4588_v13, 0.0 }
 0xa31   : > { %3281 = vadd.xlane.f32.xlu1 %v3280_v31 }
 0xa42   : > { %3373 = vrot.lane.b32.xlu1 %v5416_v51, %s4926_s28 }
 0xa46   : > { %3449 = vrot.lane.b32.xlu1 %v5424_v57, %s4926_s28 }
 0xa59   : > { %v3279_v16 = vpop.xlane.xlu0 %3278 }
 0xa5a   : > { %4589 = vrcp.f32 %v3279_v16 }
 0xa5b   : > { %4591 = vpow2.f32 %v3275_v59 }
 0xa5d   : > { %v3285_v15 = vpop.xlane.xlu0 %3284 }
 0xa5e   : > { %4593 = vrcp.f32 %v3285_v15 }
 0xa61   : > { %v3298_v18 = vpop.permute.xlu0 %3297 }
 0xa62   : > { %4357 = vmatpush3.msra.mxu0 %v3298_v18 }
 0xa63   : > { %4366 = vmatprep.subr.mxu0 %v4922_v28 }
 0xa64   : > { %v4590_v48 = vpop.eup %4589 }
 0xa65   : > { %v3293_v34 = vmul.f32 %v4590_v48, %v4584_v44  ;;  %v2236_v51 = vpop.permute.xlu0 %2235  ;;  %v4592_v62 = vpop.eup %4591 }
 0xa66   : > { %2248 = vst.msk [vmem:[#allocation2] sm:$0xff] %vm2247_vm3, %v2236_v51  ;;  %v3286_v25 = vsel %vm918_vm2, %v4592_v62, 0.0 }
 0xa67   : > { %v3622_v57 = vadd.f32 %v3293_v34, %v5626_v12  ;;  %4359 = vmatmul.mubr.msk.f32.vlgmr.msra.gmra.mrb[30].mxu0 %vm918_vm2, %v3293_v34 }
 0xa68   : > { %v4594_v19 = vpop.eup %4593  ;;  %4368 = vmatprep.mubr.msk.f32.mxu0 %vm4923_vm1, %v4922_v28 }
 0xa69   : > { %v3742_v20 = vmul.f32 0.25, %v3622_v57  ;;  %v3295_v21 = vmul.f32 %v4594_v19, %v4586_v7  ;;  %v2921_v22 = vpop.permute.xlu0 %2920 }
 0xa6a   : > { %2933 = vst.msk [vmem:[#allocation2] sm:$0xff] %vm2932_vm4, %v2921_v22  ;;  %3287 = vadd.xlane.f32.xlu1 %v3286_v25 }
 0xa6b   : > { %3746 = vst.msk [vmem:[%s5708_s17] sm:$0xff] %vm918_vm2, %v3742_v20  ;;  %v3624_v12 = vadd.f32 %v3295_v21, %v5636_v17 }
 0xa6d   : > { %v3744_v27 = vmul.f32 0.25, %v3624_v12  ;;  %v2240_v29 = vpop.permute.xlu0 %2239 }
 0xa6e   : > { %2250 = vst.msk [vmem:[#allocation2 + $0x10] sm:$0xff] %vm2247_vm3, %v2240_v29 }
 0xa6f   : > { %3748 = vst.msk [vmem:[%s5708_s17 + $0x10] sm:$0xff] %vm918_vm2, %v3744_v27 }
 0xa71   : > { %v2925_v30 = vpop.permute.xlu0 %2924 }
 0xa72   : > { %2935 = vst.msk [vmem:[#allocation2 + $0x10] sm:$0xff] %vm2932_vm4, %v2925_v30 }
 0xa7b   : > { %3525 = vrot.lane.b32.xlu1 %v5422_v55, %s4926_s28  ;;  %s3756_s28 = scalar_lea.sflag [#allocation17], %s5304_s11 }
 0xa7f   : > { %2237 = vrot.lane.b32.xlu1 %v5600_v24, %s4927_s9 }
 0xa83   : > { %2922 = vrot.lane.b32.xlu1 %v5678_v52, %s4928_s15 }
 0xa87   : > { %2241 = vrot.lane.b32.xlu1 %v5602_v26, %s4927_s9 }
 0xa8b   : > { %2926 = vrot.lane.b32.xlu1 %v5680_v43, %s4928_s15  ;;  %s4801_s15 = scalar_lea.vmem %s5772_s18, 512 }
 0xa8c   : > { %p4802_p5 = scmp.ne.s32.totalorder %s5772_s18, %s4801_s15 }
 0xa8e   : > { %p4803_p4 = pnand %p4802_p5, %p5946_p2 }
 0xa90   : > { %p4804_p11 = pneg %p4803_p4 }
 0xabe   : > { %v3282_v17 = vpop.xlane.xlu1 %3281 }
 0xabf   : > { %4595 = vrcp.f32 %v3282_v17 }
 0xac2   : > { %v3374_v32 = vpop.permute.xlu1 %3373 }
 0xac3   : > { %4362 = vmatpush3.msra.mxu1 %v3374_v32 }
 0xac4   : > { %4371 = vmatprep.subr.mxu1 %v4922_v28 }
 0xac6   : > { %v3450_v55 = vpop.permute.xlu1 %3449 }
 0xac7   : > { %4367 = vmatpush3.msra.mxu0 %v3450_v55 }
 0xac8   : > { %4369 = vmatmul.mubr.msk.f32.vlgmr.msra.gmra.mrb[32].mxu0 %vm918_vm2, %v3295_v21 }
 0xac9   : > { %v4596_v24 = vpop.eup %4595 }
 0xaca   : > { %v3294_v54 = vmul.f32 %v4596_v24, %v4588_v13 }
 0xacc   : > { %v3623_v6 = vadd.f32 %v3294_v54, %v5653_v23  ;;  %4364 = vmatmul.mubr.msk.f32.vlgmr.msra.gmra.mrb[38].mxu1 %vm918_vm2, %v3294_v54 }
 0xacd   : > { %4373 = vmatprep.mubr.msk.f32.mxu1 %vm4923_vm1, %v4922_v28 }
 0xace   : > { %v3743_v26 = vmul.f32 0.25, %v3623_v6 }
 0xad0   : > { %3747 = vst.msk [vmem:[%s5708_s17 + $0x8] sm:$0xff] %vm918_vm2, %v3743_v26 }
 0xaf7   : > { %v3288_v11 = vpop.xlane.xlu1 %3287 }
 0xaf8   : > { %4597 = vrcp.f32 %v3288_v11 }
 0xafb   : > { %v3526_v33 = vpop.permute.xlu1 %3525 }
 0xafc   : > { %4372 = vmatpush3.msra.mxu1 %v3526_v33 }
 0xaff   : > { %v2238_v35 = vpop.permute.xlu1 %2237 }
 0xb00   : > { %2249 = vst.msk [vmem:[#allocation2 + $0x8] sm:$0xff] %vm2247_vm3, %v2238_v35 }
 0xb02   : > { %v4598_v37 = vpop.eup %4597 }
 0xb03   : > { %v3296_v38 = vmul.f32 %v4598_v37, %v4592_v62  ;;  %v2923_v40 = vpop.permute.xlu1 %2922 }
 0xb04   : > { %2934 = vst.msk [vmem:[#allocation2 + $0x8] sm:$0xff] %vm2932_vm4, %v2923_v40 }
 0xb05   : > { %v3625_v23 = vadd.f32 %v3296_v38, %v5661_v36  ;;  %4374 = vmatmul.mubr.msk.f32.vlgmr.msra.gmra.mrb[40].mxu1 %vm918_vm2, %v3296_v38  ;;  %v3631_v36 = vld [vmem:[%s5943_s30 + $0x8] sm:$0xff] }
 0xb06   : > { %v4414_v43 = vpack.c.bf16 %v3631_v36, %v3630_v56 }
 0xb07   : > { %v3745_v28 = vmul.f32 0.25, %v3625_v23  ;;  %v2242_v42 = vpop.permute.xlu1 %2241 }
 0xb08   : > { %2251 = vst.msk [vmem:[#allocation2 + $0x18] sm:$0xff] %vm2247_vm3, %v2242_v42  ;;  %4415 = vmatprep.subr.bf16.mxu0 %v4414_v43 }
 0xb09   : > { %3749 = vst.msk [vmem:[%s5708_s17 + $0x18] sm:$0xff] %vm918_vm2, %v3745_v28  ;;  %4417 = vmatpush3.bf16.msra.mxu0 %v4414_v43 }
 0xb0a   : > { %4419 = vmatprep.subr.bf16.mxu0 %v4418_v39 }
 0xb0b   : > { %v2927_v49 = vpop.permute.xlu1 %2926 }
 0xb0c   : > { %2936 = vst.msk [vmem:[#allocation2 + $0x18] sm:$0xff] %vm2932_vm4, %v2927_v49 }
 0xb0d   : > { %4421 = vmatpush3.bf16.msra.mxu0 %v4418_v39 }
 0xb3a   : > { %v3369_v50 = vpop.f32.mrb[30].mxu0 }
 0xb3b   : > { %3605 = vrot.lane.b32.xlu0 %v3369_v50, %s4929_s16  ;;  %v4360_v52 = vpop.f32.mrb[31].mxu0 }
 0xb9b   : > { %v3521_v60 = vpop.f32.mrb[32].mxu0 }
 0xb9c   : > { %3609 = vrot.lane.b32.xlu0 %v3521_v60, %s4929_s16  ;;  %v4370_v61 = vpop.f32.mrb[33].mxu0 }
 0xb9f   : > { %v3445_v63 = vpop.f32.mrb[38].mxu1 }
 0xba0   : > { %3607 = vrot.lane.b32.xlu1 %v3445_v63, %s4929_s16  ;;  %v4365_v0 = vpop.f32.mrb[39].mxu1 }
 0xbad   : > { %v3606_v41 = vpop.permute.xlu0 %3605 }
 0xbae   : > { %3618 = vst.msk [vmem:[#allocation2] sm:$0xff] %vm3617_vm5, %v3606_v41 }
 0xbb5   : > { %v3626_v1 = vld [vmem:[#allocation2] sm:$0xff] }
 0xbb6   : > { %4384 = vmatprep.mubr.msk.f32.mxu0 %vm596_vm0, %v3626_v1 }
 0xbd8   : > { %v3597_v2 = vpop.f32.mrb[40].mxu1 }
 0xbd9   : > { %3611 = vrot.lane.b32.xlu1 %v3597_v2, %s4929_s16  ;;  %v4375_v3 = vpop.f32.mrb[41].mxu1  ;;  %s4930_s16 = smov [#allocation16]  }
 0xbda   : > { %s4805_s20 = sshll.u32 %s4930_s16, 4  ;;  %s4806_s20 = int_to_ptr.vmem [resolvable:$false] %s4805_s20 }
 0xbdb   : > { %s4807_s6 = scalar_lea.vmem %s4806_s20, 1024  ;;  %p4808_p13 = scmp.lt.s32.totalorder %s5772_s18, %s4806_s20 }
 0xbdc   : > { %p4809_p7 = scmp.lt.s32.totalorder %s4807_s6, %s4801_s15 }
 0xbde   : > { %p4810_p9 = por %p4809_p7, %p4808_p13 }
 0xbe0   : > { %p4811_p12 = pnand %p4810_p9, %p4804_p11 }
 0xc0e   : > { %v3610_v4 = vpop.permute.xlu0 %3609 }
 0xc0f   : > { %3620 = vst.msk [vmem:[#allocation2 + $0x10] sm:$0xff] %vm3617_vm5, %v3610_v4 }
 0xc12   : > { %v3608_v5 = vpop.permute.xlu1 %3607 }
 0xc13   : > { %3619 = vst.msk [vmem:[#allocation2 + $0x8] sm:$0xff] %vm3617_vm5, %v3608_v5 }
 0xc16   : > { %v3628_v47 = vld [vmem:[#allocation2 + $0x10] sm:$0xff] }
 0xc1a   : > { %v3627_v44 = vld [vmem:[#allocation2 + $0x8] sm:$0xff] }
 0xc1b   : > { %4385 = vmatmul.mubr.msk.f32.vlgmr.msra.gmra.mrb[34].mxu0 %vm596_vm0, %v3627_v44 }
 0xc1c   : > { %4387 = vmatprep.mubr.msk.f32.mxu0 %vm596_vm0, %v3628_v47 }
 0xc4b   : > { %v3612_v7 = vpop.permute.xlu1 %3611 }
 0xc4c   : > { %3621 = vst.msk [vmem:[#allocation2 + $0x18] sm:$0xff] %vm3617_vm5, %v3612_v7 }
 0xc53   : > { %v3629_v8 = vld [vmem:[#allocation2 + $0x18] sm:$0xff] }
 0xc54   : > { %4388 = vmatmul.mubr.msk.f32.gmra.mrb[36].mxu0 %vm596_vm0, %v3629_v8 }
 0xc55   : > { %4814 = shalt.err (!%p4811_p12)
}
 0xc56   : > { %s4815_s17 = scalar_lea.hbm %s5769_s1, 512  ;;  %s4819_s5 = scalar_lea.hbm %s5945_s3, 1024 }
 0xc57   : > { %p4816_p8 = scmp.ne.s32.totalorder %s5769_s1, %s4815_s17  ;;  %p4820_p1 = scmp.lt.u32.totalorder %s5769_s1, %s5945_s3 }
 0xc58   : > { %p4821_p6 = scmp.lt.u32.totalorder %s4819_s5, %s4815_s17  ;;  %p4823_p5 = scmp.lt.u32.totalorder %s4815_s17, %s5769_s1 }
 0xc59   : > { %p4817_p10 = pnand %p4816_p8, %p5946_p2 }
 0xc5a   : > { %p4822_p3 = por %p4821_p6, %p4820_p1 }
 0xc5b   : > { %p4818_p0 = pneg %p4817_p10 }
 0xc5c   : > { %p4824_p4 = por %p4823_p5, %p4822_p3 }
 0xc5e   : > { %p4825_p11 = pnand %p4824_p4, %p4818_p0 }
 0xc60   : > { %4828 = shalt.err (!%p4825_p11)
}
 0xc61   : > { %s4931_s26 = smov 128   ;;  %s5947_s15 = sld [smem:[#allocation35_spill]] }
 0xc62   : > { %4445 = dma.vmem_to_hbm [thread:$0]  (%p5946_p2), %s5772_s18, 512, %s5769_s1, %s3756_s28, %s4931_s26, %s4931_s26, %s4927_s9  }
 0xc63   : > { %s568_s16 = scalar_lea.vmem [#allocation15], %s5307_s19  ;;  %s5948_s28 = sld [smem:[#allocation36_spill]] }
 0xc64   : > { %s3769_s20 = sshll.u32 %s568_s16, 4  ;;  %s3751_s19 = scalar_lea.sflag [#allocation5], %s5304_s11  ;;  %s5807_s20 = int_to_ptr.vmem [resolvable:$true] %s3769_s20 }
 0xc65   : > { %s4829_s17 = scalar_lea.vmem %s5807_s20, 512  ;;  %s4932_s13 = smov [#allocation15]  }
 0xc66   : > { %p4830_p13 = scmp.ne.s32.totalorder %s5807_s20, %s4829_s17  ;;  %s4833_s14 = sshll.u32 %s4932_s13, 4  ;;  %s4834_s14 = int_to_ptr.vmem [resolvable:$false] %s4833_s14 }
 0xc67   : > { %v4060_v9 = vld [vmem:[%s5947_s15] ss:$0 sm:$0xff]  ;;  %s4835_s5 = scalar_lea.vmem %s4834_s14, 1024  ;;  %p4836_p12 = scmp.lt.s32.totalorder %s5807_s20, %s4834_s14 }
 0xc68   : > { %p4831_p7 = pnand %p4830_p13, %p5946_p2  ;;  %p4837_p8 = scmp.lt.s32.totalorder %s4835_s5, %s4829_s17 }
 0xc69   : > { %s5814_s6 = scalar_lea.hbm %s5948_s28, %s4076_s10 }
 0xc6a   : > { %p4832_p9 = pneg %p4831_p7  ;;  %p4838_p10 = por %p4837_p8, %p4836_p12 }
 0xc6c   : > { %p4839_p0 = pnand %p4838_p10, %p4832_p9 }
 0xcee   : > { %v4386_v10 = vpop.f32.mrb[34].mxu0 }
 0xcef   : > { %v3725_v45 = vadd.f32 %v4386_v10, %v4060_v9  ;;  %v3719_v13 = vpop.f32.mrb[35].mxu0 }
 0xcf0   : > { %v3720_v31 = vadd.f32 %v4060_v9, %v3719_v13 }
 0xcf1   : > { %3739 = vst.msk [vmem:[%s568_s16 + $0x8] sm:$0xff] %vm596_vm0, %v3725_v45 }
 0xcf2   : > { %3738 = vst.msk [vmem:[%s568_s16] sm:$0xff] %vm596_vm0, %v3720_v31 }
 0xd27   : > { %v4389_v53 = vpop.f32.mrb[36].mxu0 }
 0xd28   : > { %v3735_v14 = vadd.f32 %v4389_v53, %v4060_v9  ;;  %v3729_v59 = vpop.f32.mrb[37].mxu0 }
 0xd29   : > { %v3730_v16 = vadd.f32 %v4060_v9, %v3729_v59 }
 0xd2a   : > { %3741 = vst.msk [vmem:[%s568_s16 + $0x18] sm:$0xff] %vm596_vm0, %v3735_v14 }
 0xd2b   : > { %3740 = vst.msk [vmem:[%s568_s16 + $0x10] sm:$0xff] %vm596_vm0, %v3730_v16 }
 0xd2c   : > { %4842 = shalt.err (!%p4839_p0)
}
 0xd2d   : > { %s4843_s25 = scalar_lea.hbm %s5814_s6, 512  ;;  %s4847_s12 = scalar_lea.hbm %s5948_s28, 1024 }
 0xd2e   : > { %p4844_p1 = scmp.ne.s32.totalorder %s5814_s6, %s4843_s25  ;;  %p4848_p5 = scmp.lt.u32.totalorder %s5814_s6, %s5948_s28 }
 0xd2f   : > { %p4849_p4 = scmp.lt.u32.totalorder %s4847_s12, %s4843_s25  ;;  %p4851_p13 = scmp.lt.u32.totalorder %s4843_s25, %s5814_s6 }
 0xd30   : > { %p4845_p6 = pnand %p4844_p1, %p5946_p2 }
 0xd31   : > { %p4850_p11 = por %p4849_p4, %p4848_p5 }
 0xd32   : > { %p4846_p3 = pneg %p4845_p6 }
 0xd33   : > { %p4852_p7 = por %p4851_p13, %p4850_p11 }
 0xd35   : > { %p4853_p9 = pnand %p4852_p7, %p4846_p3 }
 0xd37   : > { %4856 = shalt.err (!%p4853_p9)
}
 0xd38   : > { %4444 = dma.vmem_to_hbm [thread:$0]  (%p5946_p2), %s5807_s20, 512, %s5814_s6, %s3751_s19, %s4931_s26, %s4931_s26, %s4927_s9  }
 0xd39 PF: > { %s5949_s15 = sld [smem:[#allocation24_spill]]  ;;  %s5950_s16 = sld [smem:[#allocation26_spill]] }
 0xd3a   : > { %s5951_s1 = sld [smem:[#allocation25_spill]] }
 0xd3f   : > { %s3800_s18 = sand.u32 1, %s5949_s15   ;;  %p5952_p12 = scmp.ne.s32.totalorder %s5950_s16, 0 }
 0xd40   : > { %p5953_p8 = scmp.ge.s32.totalorder %s5951_s1, 2  ;;  %s3801_s17 = scalar_lea.sflag [#allocation5], %s3800_s18 }
 0xd42   : > { %p4472_p10 = pnand %p5953_p8, %p5952_p12 }
 0xd44   : > { %4890 = dma.done.wait (!%p4472_p10), %s3801_s17, 512  }
 0xd45   : > { %4892 = vsyncadd (!%p4472_p10), %s3801_s17, 4294966784  ;;  %s3810_s27 = scalar_lea.sflag [#allocation17], %s3800_s18 }
 0xd46   : > { %4894 = dma.done.wait (!%p4472_p10), %s3810_s27, 512  }
 0xd47   : > { %4896 = vsyncadd (!%p4472_p10), %s3810_s27, 4294966784  ;;  %s5954_s24 = sld [smem:[#allocation27_spill]]  ;;  %s5955_s11 = sld [smem:[#allocation29_spill]] }
 0xd48   : > { %s5956_s21 = smov %s4903_s22  ;;  %s5957_s22 = smov %s4907_s23 }
 0xd4d   : > { %p34_p2 = scmp.ge.s32.totalorder %s5954_s24, 4   ;;  %s5958_s23 = smov %s5955_s11 }
 0xd4f   :  { %36 = sbr.rel (!%p34_p2) target bundleno = 20 (0x14), region = 166 }
 0xd56   :  { %3815 = vsyncpa [#allocation4], 1 }
 0xd57   :  { %3817 = vsyncpa [#allocation4 + $0x1], 1 }
 0xd58   :  { %3818 = vsyncpa [#allocation7], 1 }
 0xd59   :  { %3820 = vsyncpa [#allocation7 + $0x1], 1 }
 0xd5a   :  { %3821 = vsyncpa [#allocation10], 1 }
 0xd5b   :  { %3822 = vsyncpa [#allocation13], 1 }
 0xd5c   :  { %3823 = vsyncpa [#allocation5], 1 }
 0xd5d   :  { %3825 = vsyncpa [#allocation5 + $0x1], 1 }
 0xd5e   :  { %3826 = vsyncpa [#allocation17], 1 }
 0xd5f   :  { %3828 = vsyncpa [#allocation17 + $0x1], 1 }

</bundles_post_ra>
